<compile_context>
chip_gen: v7x
topology: tpu7x:2x2x1
jax: 0.10.0
libtpu: 0.0.40
codegen_flags: <defaults>
</compile_context>

<pallas_src>
import math
import functools

import jax
import jax.numpy as jnp
import numpy as np
from jax.experimental import pallas as pl
from jax.experimental.pallas import tpu as pltpu


def bottle2neck_kernel(
    x_ref, mask_ref, tapmask_ref, pool_ref, bcast_ref,
    w1_ref, b1_ref, g1_ref, bt1_ref,
    cw_ref, cb_ref, cg_ref, cbt_ref,
    w3_ref, b3_ref, g3_ref, bt3_ref,
    sw1_ref, sb1_ref, sw2_ref, sb2_ref,
    out_ref,
    *, B, L, BLp, width, scale, K, dilation, pad, eps,
):
    nums = scale - 1
    f32 = jnp.float32
    mm = w1_ref.dtype                       # matmul operand dtype (f32 or bf16)
    mask = mask_ref[...]                    # (1, BLp) 1.0 on the B*L real lanes
    inv_n = 1.0 / float(B * L)

    def bn(h, gamma, beta):
        # training-mode BatchNorm1d: per-channel stats over the folded (batch,
        # length) lane axis, masked to the real columns; biased variance.
        mean = (h * mask).sum(axis=1, keepdims=True) * inv_n
        cent = h - mean                     # reused for var AND for the output
        cm = cent * mask
        var = (cm * cm).sum(axis=1, keepdims=True) * inv_n
        inv = jax.lax.rsqrt(var + eps)
        return cent * (inv * gamma) + beta

    # ---- conv1 (1x1) + ReLU + bn1 : one (C1, Cin) @ (Cin, B*L) matmul ----
    h1 = jnp.dot(w1_ref[...], x_ref[...].astype(mm),
                 preferred_element_type=f32) + b1_ref[...]
    h1 = bn(jnp.maximum(h1, 0.0), g1_ref[...], bt1_ref[...])

    cb = cb_ref[...]        # (width, nums)
    cg = cg_ref[...]
    cbt = cbt_ref[...]
    tap_mask = tapmask_ref[...]             # (K, BLp)

    # ---- Res2Net hierarchical dilated convs (per branch: one fused matmul) ----
    chunks = []
    sp = None
    for i in range(nums):
        spx_i = h1[i * width:(i + 1) * width, :]
        s = spx_i if i == 0 else sp + spx_i
        taps = []
        for k in range(K):
            sh = k * dilation - pad                  # conv tap offset
            amt = (-sh) % BLp                        # lane-roll amount (static)
            rolled = s if amt == 0 else pltpu.roll(s, shift=amt, axis=1)
            taps.append((rolled * tap_mask[k:k + 1, :]).astype(mm))
        stacked = jnp.concatenate(taps, axis=0)      # (K*width, BLp)
        y = jnp.dot(cw_ref[i], stacked, preferred_element_type=f32) + cb[:, i:i + 1]
        sp = bn(jnp.maximum(y, 0.0), cg[:, i:i + 1], cbt[:, i:i + 1])
        chunks.append(sp)
    chunks.append(h1[nums * width:scale * width, :])

    # ---- conv3 (1x1): one (planes, scale*width) @ (scale*width, B*L) matmul ----
    cat = jnp.concatenate(chunks, axis=0).astype(mm)
    h3 = jnp.dot(w3_ref[...], cat, preferred_element_type=f32) + b3_ref[...]
    h3 = bn(jnp.maximum(h3, 0.0), g3_ref[...], bt3_ref[...])

    # ---- SE (batched over B via pooling / broadcast matmuls) + residual ----
    pooled = jnp.dot(h3, pool_ref[...], preferred_element_type=f32)        # (planes, B)
    z = jnp.maximum(
        jnp.dot(sw1_ref[...], pooled.astype(mm), preferred_element_type=f32) + sb1_ref[...],
        0.0)
    g = jnp.dot(sw2_ref[...], z.astype(mm), preferred_element_type=f32) + sb2_ref[...]
    gate = 1.0 / (1.0 + jnp.exp(-g))                                       # (planes, B), fp32
    gate_bl = jnp.dot(gate, bcast_ref[...], preferred_element_type=f32)    # (planes, BLp)
    out_ref[...] = h3 * gate_bl + x_ref[...]


def bottle2neck_pallas(x, p, *, kernel_size, dilation, scale, eps=1e-5,
                       matmul_dtype=jnp.float32):
    B, Cin, L = x.shape
    planes = p['w3'].shape[0]
    width = p['cw'].shape[1]
    nums = scale - 1
    K = kernel_size
    pad = (K // 2) * dilation
    BL = B * L
    BLp = ((BL + 127) // 128) * 128          # lane-dense last dim
    mm = matmul_dtype

    # Activations: (B, C, L) -> (C, B*L) slab, zero-padded on the lane axis.
    x_slab = jnp.transpose(x, (1, 0, 2)).reshape(Cin, BL)
    x_slab = jnp.pad(x_slab, ((0, 0), (0, BLp - BL)))

    # Host-side constant masks / segment matrices.
    cols = np.arange(BLp)
    t_idx = cols % L
    real = cols < BL
    col_mask = real.astype(np.float32)[None, :]                      # (1, BLp)
    tap_mask = np.zeros((K, BLp), np.float32)
    for k in range(K):
        sh = k * dilation - pad
        tap_mask[k] = (real & (t_idx + sh >= 0) & (t_idx + sh < L)).astype(np.float32)
    pool_mat = np.zeros((BLp, B), np.float32)                        # mean over L per batch
    bcast_mat = np.zeros((B, BLp), np.float32)                       # gate broadcast
    for b in range(B):
        pool_mat[b * L:(b + 1) * L, b] = 1.0 / L
        bcast_mat[b, b * L:(b + 1) * L] = 1.0

    # Conv weights packed for the fused K-tap matmul:
    # cw_flat[i][:, k*width + c] == convs[i].weight[:, c, k]  (matches tap stacking order).
    cw_flat = jnp.transpose(p['cw'], (0, 1, 3, 2)).reshape(nums, width, K * width)

    args = (
        x_slab,
        jnp.asarray(col_mask), jnp.asarray(tap_mask),
        jnp.asarray(pool_mat), jnp.asarray(bcast_mat),
        p['w1'].astype(mm), p['b1'][:, None], p['g1'][:, None], p['bt1'][:, None],
        cw_flat.astype(mm), p['cb'].T, p['cg'].T, p['cbt'].T,
        p['w3'].astype(mm), p['b3'][:, None], p['g3'][:, None], p['bt3'][:, None],
        p['sw1'].astype(mm), p['sb1'][:, None], p['sw2'].astype(mm), p['sb2'][:, None],
    )

    # Rough cost / VMEM hints.
    se_bneck = p['sw1'].shape[0]
    flops = int(2 * BL * (p['w1'].shape[0] * Cin
                          + nums * width * (K * width)
                          + planes * scale * width)
                + 2 * B * (se_bneck * planes * 2 + planes))
    transcendentals = int(3 * planes + nums * width + planes * B)
    in_bytes = sum(int(np.prod(a.shape)) * np.dtype(a.dtype).itemsize for a in args)
    out_bytes = planes * BLp * 4
    vmem_limit = int(min(64 * 2 ** 20, max(16 * 2 ** 20, 8 * (in_bytes + out_bytes))))

    kernel = functools.partial(
        bottle2neck_kernel,
        B=B, L=L, BLp=BLp, width=width, scale=scale,
        K=K, dilation=dilation, pad=pad, eps=eps,
    )
    vmem = pl.BlockSpec(memory_space=pltpu.MemorySpace.VMEM)
    out_slab = pl.pallas_call(
        kernel,
        out_shape=jax.ShapeDtypeStruct((planes, BLp), jnp.float32),
        in_specs=[vmem] * len(args),
        out_specs=vmem,
        compiler_params=pltpu.CompilerParams(vmem_limit_bytes=vmem_limit),
        cost_estimate=pl.CostEstimate(flops=flops,
                                      transcendentals=transcendentals,
                                      bytes_accessed=in_bytes + out_bytes),
    )(*args)

    # Back to NCL layout (pure layout plumbing in the wrapper).
    return jnp.transpose(out_slab[:, :BL].reshape(planes, B, L), (1, 0, 2))


# ----------------------------- pure-JAX reference -----------------------------
def bottle2neck_ref(x, p, *, kernel_size, dilation, scale, eps=1e-5):
    width = p['cw'].shape[1]
    nums = scale - 1
    pad = (kernel_size // 2) * dilation
    L = x.shape[2]

    def conv1x1(h, w, b):
        return jnp.einsum('oc,bcl->bol', w, h) + b[None, :, None]

    def bn(h, g, bt):
        m = h.mean(axis=(0, 2), keepdims=True)
        v = ((h - m) ** 2).mean(axis=(0, 2), keepdims=True)
        return (h - m) / jnp.sqrt(v + eps) * g[None, :, None] + bt[None, :, None]

    relu = lambda h: jnp.maximum(h, 0.0)

    out = bn(relu(conv1x1(x, p['w1'], p['b1'])), p['g1'], p['bt1'])
    spx = [out[:, i * width:(i + 1) * width, :] for i in range(scale)]
    outs = []
    sp = None
    for i in range(nums):
        sp = spx[i] if i == 0 else sp + spx[i]
        spp = jnp.pad(sp, ((0, 0), (0, 0), (pad, pad)))
        y = p['cb'][i][None, :, None]
        for k in range(kernel_size):
            y = y + jnp.einsum('oi,bil->bol', p['cw'][i, :, :, k],
                               spp[:, :, k * dilation:k * dilation + L])
        sp = bn(relu(y), p['cg'][i], p['cbt'][i])
        outs.append(sp)
    outs.append(spx[nums])
    cat = jnp.concatenate(outs, axis=1)
    out = bn(relu(conv1x1(cat, p['w3'], p['b3'])), p['g3'], p['bt3'])
    pooled = out.mean(axis=2, keepdims=True)
    z = relu(jnp.einsum('oc,bcl->bol', p['sw1'], pooled) + p['sb1'][None, :, None])
    gate = jax.nn.sigmoid(jnp.einsum('oc,bcl->bol', p['sw2'], z) + p['sb2'][None, :, None])
    return out * gate + x


def init_params(key, inplanes, planes, kernel_size, scale):
    width = int(math.floor(planes / scale))
    nums = scale - 1
    ks = jax.random.split(key, 16)

    def rnd(k, shape, s=0.1):
        return jax.random.normal(k, shape, dtype=jnp.float32) * s

    se_bneck = 128  # SEModule default bottleneck
    return {
        'w1': rnd(ks[0], (width * scale, inplanes)),
        'b1': rnd(ks[1], (width * scale,)),
        'g1': 1.0 + rnd(ks[2], (width * scale,)),
        'bt1': rnd(ks[3], (width * scale,)),
        'cw': rnd(ks[4], (nums, width, width, kernel_size)),
        'cb': rnd(ks[5], (nums, width)),
        'cg': 1.0 + rnd(ks[6], (nums, width)),
        'cbt': rnd(ks[7], (nums, width)),
        'w3': rnd(ks[8], (planes, width * scale)),
        'b3': rnd(ks[9], (planes,)),
        'g3': 1.0 + rnd(ks[10], (planes,)),
        'bt3': rnd(ks[11], (planes,)),
        'sw1': rnd(ks[12], (se_bneck, planes)),
        'sb1': rnd(ks[13], (se_bneck,)),
        'sw2': rnd(ks[14], (planes, se_bneck)),
        'sb2': rnd(ks[15], (planes,)),
    }


if __name__ == "__main__":
    # Module-default scale=8 -> width=8 (sublane-aligned chunks); B*L = 32 pads
    # to one 128-lane vreg.  Residual add requires inplanes == planes.
    B, inplanes, planes, L = 2, 64, 64, 16
    kernel_size, dilation, scale = 3, 2, 8

    key = jax.random.PRNGKey(0)
    kx, kp = jax.random.split(key)
    x = jax.random.normal(kx, (B, inplanes, L), dtype=jnp.float32)
    params = init_params(kp, inplanes, planes, kernel_size, scale)

    ref = jax.block_until_ready(
        bottle2neck_ref(x, params, kernel_size=kernel_size, dilation=dilation, scale=scale))

    # fp32 matmul path: strict correctness check.
    out_f32 = jax.block_until_ready(
        bottle2neck_pallas(x, params, kernel_size=kernel_size, dilation=dilation,
                           scale=scale, matmul_dtype=jnp.float32))
    np.testing.assert_allclose(np.asarray(out_f32), np.asarray(ref), rtol=1e-2, atol=1e-2)

    # bf16 matmul-operand path (fp32 accumulation / BN / sigmoid): looser check.
    out_bf16 = jax.block_until_ready(
        bottle2neck_pallas(x, params, kernel_size=kernel_size, dilation=dilation,
                           scale=scale, matmul_dtype=jnp.bfloat16))
    np.testing.assert_allclose(np.asarray(out_bf16), np.asarray(ref), rtol=1e-1, atol=1e-1)

    print("KERNEL_OK")
</pallas_src>

<mosaic_0001>
module attributes {stable_mosaic.version = 11 : i64} {
  func.func @bottle2neck_kernel(%arg0: memref<64x128xf32, #tpu.memory_space<vmem>>, %arg1: memref<1x128xf32, #tpu.memory_space<vmem>>, %arg2: memref<3x128xf32, #tpu.memory_space<vmem>>, %arg3: memref<128x2xf32, #tpu.memory_space<vmem>>, %arg4: memref<2x128xf32, #tpu.memory_space<vmem>>, %arg5: memref<64x64xf32, #tpu.memory_space<vmem>>, %arg6: memref<64x1xf32, #tpu.memory_space<vmem>>, %arg7: memref<64x1xf32, #tpu.memory_space<vmem>>, %arg8: memref<64x1xf32, #tpu.memory_space<vmem>>, %arg9: memref<7x8x24xf32, #tpu.memory_space<vmem>>, %arg10: memref<8x7xf32, #tpu.memory_space<vmem>>, %arg11: memref<8x7xf32, #tpu.memory_space<vmem>>, %arg12: memref<8x7xf32, #tpu.memory_space<vmem>>, %arg13: memref<64x64xf32, #tpu.memory_space<vmem>>, %arg14: memref<64x1xf32, #tpu.memory_space<vmem>>, %arg15: memref<64x1xf32, #tpu.memory_space<vmem>>, %arg16: memref<64x1xf32, #tpu.memory_space<vmem>>, %arg17: memref<128x64xf32, #tpu.memory_space<vmem>>, %arg18: memref<128x1xf32, #tpu.memory_space<vmem>>, %arg19: memref<64x128xf32, #tpu.memory_space<vmem>>, %arg20: memref<64x1xf32, #tpu.memory_space<vmem>>, %arg21: memref<64x128xf32, #tpu.memory_space<vmem>>) attributes {dimension_semantics = [], scalar_prefetch = 0 : i64, scratch_operands = 0 : i64, tpu.core_type = #tpu.core_type<tc>} {
    %c0 = arith.constant 0 : index
    %c0_0 = arith.constant 0 : index
    %0 = vector.load %arg1[%c0, %c0_0] : memref<1x128xf32, #tpu.memory_space<vmem>>, vector<1x128xf32>
    %c0_1 = arith.constant 0 : index
    %c0_2 = arith.constant 0 : index
    %1 = vector.load %arg5[%c0_1, %c0_2] : memref<64x64xf32, #tpu.memory_space<vmem>>, vector<64x64xf32>
    %c0_3 = arith.constant 0 : index
    %c0_4 = arith.constant 0 : index
    %2 = vector.load %arg0[%c0_3, %c0_4] : memref<64x128xf32, #tpu.memory_space<vmem>>, vector<64x128xf32>
    %cst = arith.constant dense<0.000000e+00> : vector<64x128xf32>
    %3 = tpu.matmul %1, %2, %cst {dimension_numbers = #tpu.dot_dimension_numbers<[1], [0], [0], [1], [0, 0, 1, 1], [], []>} : vector<64x64xf32>, vector<64x128xf32>, vector<64x128xf32> -> vector<64x128xf32>
    %c0_5 = arith.constant 0 : index
    %c0_6 = arith.constant 0 : index
    %4 = vector.load %arg6[%c0_5, %c0_6] : memref<64x1xf32, #tpu.memory_space<vmem>>, vector<64x1xf32>
    %5 = vector.broadcast %4 : vector<64x1xf32> to vector<64x128xf32>
    %6 = arith.addf %3, %5 : vector<64x128xf32>
    %cst_7 = arith.constant 0.000000e+00 : f32
    %7 = vector.broadcast %cst_7 : f32 to vector<64x128xf32>
    %8 = arith.maximumf %6, %7 : vector<64x128xf32>
    %c0_8 = arith.constant 0 : index
    %c0_9 = arith.constant 0 : index
    %9 = vector.load %arg7[%c0_8, %c0_9] : memref<64x1xf32, #tpu.memory_space<vmem>>, vector<64x1xf32>
    %c0_10 = arith.constant 0 : index
    %c0_11 = arith.constant 0 : index
    %10 = vector.load %arg8[%c0_10, %c0_11] : memref<64x1xf32, #tpu.memory_space<vmem>>, vector<64x1xf32>
    %11 = vector.broadcast %0 : vector<1x128xf32> to vector<64x128xf32>
    %12 = arith.mulf %8, %11 : vector<64x128xf32>
    %cst_12 = arith.constant dense<0.000000e+00> : vector<64xf32>
    %13 = vector.multi_reduction <add>, %12, %cst_12 [1] : vector<64x128xf32> to vector<64xf32>
    %14 = vector.shape_cast %13 : vector<64xf32> to vector<64x1xf32>
    %cst_13 = arith.constant 3.125000e-02 : f32
    %15 = vector.broadcast %cst_13 : f32 to vector<64x1xf32>
    %16 = arith.mulf %14, %15 : vector<64x1xf32>
    %17 = vector.broadcast %16 : vector<64x1xf32> to vector<64x128xf32>
    %18 = arith.subf %8, %17 : vector<64x128xf32>
    %19 = vector.broadcast %0 : vector<1x128xf32> to vector<64x128xf32>
    %20 = arith.mulf %18, %19 : vector<64x128xf32>
    %21 = arith.mulf %20, %20 : vector<64x128xf32>
    %cst_14 = arith.constant dense<0.000000e+00> : vector<64xf32>
    %22 = vector.multi_reduction <add>, %21, %cst_14 [1] : vector<64x128xf32> to vector<64xf32>
    %23 = vector.shape_cast %22 : vector<64xf32> to vector<64x1xf32>
    %cst_15 = arith.constant 3.125000e-02 : f32
    %24 = vector.broadcast %cst_15 : f32 to vector<64x1xf32>
    %25 = arith.mulf %23, %24 : vector<64x1xf32>
    %cst_16 = arith.constant 9.99999974E-6 : f32
    %26 = vector.broadcast %cst_16 : f32 to vector<64x1xf32>
    %27 = arith.addf %25, %26 : vector<64x1xf32>
    %28 = math.rsqrt %27 : vector<64x1xf32>
    %29 = arith.mulf %28, %9 : vector<64x1xf32>
    %30 = vector.broadcast %29 : vector<64x1xf32> to vector<64x128xf32>
    %31 = arith.mulf %18, %30 : vector<64x128xf32>
    %32 = vector.broadcast %10 : vector<64x1xf32> to vector<64x128xf32>
    %33 = arith.addf %31, %32 : vector<64x128xf32>
    %c0_17 = arith.constant 0 : index
    %c0_18 = arith.constant 0 : index
    %34 = vector.load %arg10[%c0_17, %c0_18] : memref<8x7xf32, #tpu.memory_space<vmem>>, vector<8x7xf32>
    %c0_19 = arith.constant 0 : index
    %c0_20 = arith.constant 0 : index
    %35 = vector.load %arg11[%c0_19, %c0_20] : memref<8x7xf32, #tpu.memory_space<vmem>>, vector<8x7xf32>
    %c0_21 = arith.constant 0 : index
    %c0_22 = arith.constant 0 : index
    %36 = vector.load %arg12[%c0_21, %c0_22] : memref<8x7xf32, #tpu.memory_space<vmem>>, vector<8x7xf32>
    %c0_23 = arith.constant 0 : index
    %c0_24 = arith.constant 0 : index
    %37 = vector.load %arg2[%c0_23, %c0_24] : memref<3x128xf32, #tpu.memory_space<vmem>>, vector<3x128xf32>
    %38 = vector.extract_strided_slice %33 {offsets = [0, 0], sizes = [8, 128], strides = [1, 1]} : vector<64x128xf32> to vector<8x128xf32>
    %c2_i32 = arith.constant 2 : i32
    %39 = tpu.dynamic_rotate %38 by %c2_i32 dim 1 : vector<8x128xf32>, i32 -> vector<8x128xf32>
    %40 = vector.extract_strided_slice %37 {offsets = [0, 0], sizes = [1, 128], strides = [1, 1]} : vector<3x128xf32> to vector<1x128xf32>
    %41 = vector.broadcast %40 : vector<1x128xf32> to vector<8x128xf32>
    %42 = arith.mulf %39, %41 : vector<8x128xf32>
    %43 = vector.extract_strided_slice %37 {offsets = [1, 0], sizes = [1, 128], strides = [1, 1]} : vector<3x128xf32> to vector<1x128xf32>
    %44 = vector.broadcast %43 : vector<1x128xf32> to vector<8x128xf32>
    %45 = arith.mulf %38, %44 : vector<8x128xf32>
    %c126_i32 = arith.constant 126 : i32
    %46 = tpu.dynamic_rotate %38 by %c126_i32 dim 1 : vector<8x128xf32>, i32 -> vector<8x128xf32>
    %47 = vector.extract_strided_slice %37 {offsets = [2, 0], sizes = [1, 128], strides = [1, 1]} : vector<3x128xf32> to vector<1x128xf32>
    %48 = vector.broadcast %47 : vector<1x128xf32> to vector<8x128xf32>
    %49 = arith.mulf %46, %48 : vector<8x128xf32>
    %50 = tpu.concatenate %42, %45, %49 in 0 : vector<8x128xf32>, vector<8x128xf32>, vector<8x128xf32> -> vector<24x128xf32>
    %c0_25 = arith.constant 0 : index
    %c0_26 = arith.constant 0 : index
    %c0_27 = arith.constant 0 : index
    %51 = vector.load %arg9[%c0_25, %c0_26, %c0_27] : memref<7x8x24xf32, #tpu.memory_space<vmem>>, vector<1x8x24xf32>
    %52 = vector.shape_cast %51 : vector<1x8x24xf32> to vector<8x24xf32>
    %cst_28 = arith.constant dense<0.000000e+00> : vector<8x128xf32>
    %53 = tpu.matmul %52, %50, %cst_28 {dimension_numbers = #tpu.dot_dimension_numbers<[1], [0], [0], [1], [0, 0, 1, 1], [], []>} : vector<8x24xf32>, vector<24x128xf32>, vector<8x128xf32> -> vector<8x128xf32>
    %54 = vector.extract_strided_slice %34 {offsets = [0, 0], sizes = [8, 1], strides = [1, 1]} : vector<8x7xf32> to vector<8x1xf32>
    %55 = vector.broadcast %54 : vector<8x1xf32> to vector<8x128xf32>
    %56 = arith.addf %53, %55 : vector<8x128xf32>
    %cst_29 = arith.constant 0.000000e+00 : f32
    %57 = vector.broadcast %cst_29 : f32 to vector<8x128xf32>
    %58 = arith.maximumf %56, %57 : vector<8x128xf32>
    %59 = vector.extract_strided_slice %35 {offsets = [0, 0], sizes = [8, 1], strides = [1, 1]} : vector<8x7xf32> to vector<8x1xf32>
    %60 = vector.extract_strided_slice %36 {offsets = [0, 0], sizes = [8, 1], strides = [1, 1]} : vector<8x7xf32> to vector<8x1xf32>
    %61 = vector.broadcast %0 : vector<1x128xf32> to vector<8x128xf32>
    %62 = arith.mulf %58, %61 : vector<8x128xf32>
    %cst_30 = arith.constant dense<0.000000e+00> : vector<8xf32>
    %63 = vector.multi_reduction <add>, %62, %cst_30 [1] : vector<8x128xf32> to vector<8xf32>
    %64 = vector.shape_cast %63 : vector<8xf32> to vector<8x1xf32>
    %cst_31 = arith.constant 3.125000e-02 : f32
    %65 = vector.broadcast %cst_31 : f32 to vector<8x1xf32>
    %66 = arith.mulf %64, %65 : vector<8x1xf32>
    %67 = vector.broadcast %66 : vector<8x1xf32> to vector<8x128xf32>
    %68 = arith.subf %58, %67 : vector<8x128xf32>
    %69 = vector.broadcast %0 : vector<1x128xf32> to vector<8x128xf32>
    %70 = arith.mulf %68, %69 : vector<8x128xf32>
    %71 = arith.mulf %70, %70 : vector<8x128xf32>
    %cst_32 = arith.constant dense<0.000000e+00> : vector<8xf32>
    %72 = vector.multi_reduction <add>, %71, %cst_32 [1] : vector<8x128xf32> to vector<8xf32>
    %73 = vector.shape_cast %72 : vector<8xf32> to vector<8x1xf32>
    %cst_33 = arith.constant 3.125000e-02 : f32
    %74 = vector.broadcast %cst_33 : f32 to vector<8x1xf32>
    %75 = arith.mulf %73, %74 : vector<8x1xf32>
    %cst_34 = arith.constant 9.99999974E-6 : f32
    %76 = vector.broadcast %cst_34 : f32 to vector<8x1xf32>
    %77 = arith.addf %75, %76 : vector<8x1xf32>
    %78 = math.rsqrt %77 : vector<8x1xf32>
    %79 = arith.mulf %78, %59 : vector<8x1xf32>
    %80 = vector.broadcast %79 : vector<8x1xf32> to vector<8x128xf32>
    %81 = arith.mulf %68, %80 : vector<8x128xf32>
    %82 = vector.broadcast %60 : vector<8x1xf32> to vector<8x128xf32>
    %83 = arith.addf %81, %82 : vector<8x128xf32>
    %84 = vector.extract_strided_slice %33 {offsets = [8, 0], sizes = [8, 128], strides = [1, 1]} : vector<64x128xf32> to vector<8x128xf32>
    %85 = arith.addf %83, %84 : vector<8x128xf32>
    %c2_i32_35 = arith.constant 2 : i32
    %86 = tpu.dynamic_rotate %85 by %c2_i32_35 dim 1 : vector<8x128xf32>, i32 -> vector<8x128xf32>
    %87 = vector.extract_strided_slice %37 {offsets = [0, 0], sizes = [1, 128], strides = [1, 1]} : vector<3x128xf32> to vector<1x128xf32>
    %88 = vector.broadcast %87 : vector<1x128xf32> to vector<8x128xf32>
    %89 = arith.mulf %86, %88 : vector<8x128xf32>
    %90 = vector.extract_strided_slice %37 {offsets = [1, 0], sizes = [1, 128], strides = [1, 1]} : vector<3x128xf32> to vector<1x128xf32>
    %91 = vector.broadcast %90 : vector<1x128xf32> to vector<8x128xf32>
    %92 = arith.mulf %85, %91 : vector<8x128xf32>
    %c126_i32_36 = arith.constant 126 : i32
    %93 = tpu.dynamic_rotate %85 by %c126_i32_36 dim 1 : vector<8x128xf32>, i32 -> vector<8x128xf32>
    %94 = vector.extract_strided_slice %37 {offsets = [2, 0], sizes = [1, 128], strides = [1, 1]} : vector<3x128xf32> to vector<1x128xf32>
    %95 = vector.broadcast %94 : vector<1x128xf32> to vector<8x128xf32>
    %96 = arith.mulf %93, %95 : vector<8x128xf32>
    %97 = tpu.concatenate %89, %92, %96 in 0 : vector<8x128xf32>, vector<8x128xf32>, vector<8x128xf32> -> vector<24x128xf32>
    %c1 = arith.constant 1 : index
    %c0_37 = arith.constant 0 : index
    %c0_38 = arith.constant 0 : index
    %98 = vector.load %arg9[%c1, %c0_37, %c0_38] : memref<7x8x24xf32, #tpu.memory_space<vmem>>, vector<1x8x24xf32>
    %99 = vector.shape_cast %98 : vector<1x8x24xf32> to vector<8x24xf32>
    %cst_39 = arith.constant dense<0.000000e+00> : vector<8x128xf32>
    %100 = tpu.matmul %99, %97, %cst_39 {dimension_numbers = #tpu.dot_dimension_numbers<[1], [0], [0], [1], [0, 0, 1, 1], [], []>} : vector<8x24xf32>, vector<24x128xf32>, vector<8x128xf32> -> vector<8x128xf32>
    %101 = vector.extract_strided_slice %34 {offsets = [0, 1], sizes = [8, 1], strides = [1, 1]} : vector<8x7xf32> to vector<8x1xf32>
    %102 = vector.broadcast %101 : vector<8x1xf32> to vector<8x128xf32>
    %103 = arith.addf %100, %102 : vector<8x128xf32>
    %cst_40 = arith.constant 0.000000e+00 : f32
    %104 = vector.broadcast %cst_40 : f32 to vector<8x128xf32>
    %105 = arith.maximumf %103, %104 : vector<8x128xf32>
    %106 = vector.extract_strided_slice %35 {offsets = [0, 1], sizes = [8, 1], strides = [1, 1]} : vector<8x7xf32> to vector<8x1xf32>
    %107 = vector.extract_strided_slice %36 {offsets = [0, 1], sizes = [8, 1], strides = [1, 1]} : vector<8x7xf32> to vector<8x1xf32>
    %108 = vector.broadcast %0 : vector<1x128xf32> to vector<8x128xf32>
    %109 = arith.mulf %105, %108 : vector<8x128xf32>
    %cst_41 = arith.constant dense<0.000000e+00> : vector<8xf32>
    %110 = vector.multi_reduction <add>, %109, %cst_41 [1] : vector<8x128xf32> to vector<8xf32>
    %111 = vector.shape_cast %110 : vector<8xf32> to vector<8x1xf32>
    %cst_42 = arith.constant 3.125000e-02 : f32
    %112 = vector.broadcast %cst_42 : f32 to vector<8x1xf32>
    %113 = arith.mulf %111, %112 : vector<8x1xf32>
    %114 = vector.broadcast %113 : vector<8x1xf32> to vector<8x128xf32>
    %115 = arith.subf %105, %114 : vector<8x128xf32>
    %116 = vector.broadcast %0 : vector<1x128xf32> to vector<8x128xf32>
    %117 = arith.mulf %115, %116 : vector<8x128xf32>
    %118 = arith.mulf %117, %117 : vector<8x128xf32>
    %cst_43 = arith.constant dense<0.000000e+00> : vector<8xf32>
    %119 = vector.multi_reduction <add>, %118, %cst_43 [1] : vector<8x128xf32> to vector<8xf32>
    %120 = vector.shape_cast %119 : vector<8xf32> to vector<8x1xf32>
    %cst_44 = arith.constant 3.125000e-02 : f32
    %121 = vector.broadcast %cst_44 : f32 to vector<8x1xf32>
    %122 = arith.mulf %120, %121 : vector<8x1xf32>
    %cst_45 = arith.constant 9.99999974E-6 : f32
    %123 = vector.broadcast %cst_45 : f32 to vector<8x1xf32>
    %124 = arith.addf %122, %123 : vector<8x1xf32>
    %125 = math.rsqrt %124 : vector<8x1xf32>
    %126 = arith.mulf %125, %106 : vector<8x1xf32>
    %127 = vector.broadcast %126 : vector<8x1xf32> to vector<8x128xf32>
    %128 = arith.mulf %115, %127 : vector<8x128xf32>
    %129 = vector.broadcast %107 : vector<8x1xf32> to vector<8x128xf32>
    %130 = arith.addf %128, %129 : vector<8x128xf32>
    %131 = vector.extract_strided_slice %33 {offsets = [16, 0], sizes = [8, 128], strides = [1, 1]} : vector<64x128xf32> to vector<8x128xf32>
    %132 = arith.addf %130, %131 : vector<8x128xf32>
    %c2_i32_46 = arith.constant 2 : i32
    %133 = tpu.dynamic_rotate %132 by %c2_i32_46 dim 1 : vector<8x128xf32>, i32 -> vector<8x128xf32>
    %134 = vector.extract_strided_slice %37 {offsets = [0, 0], sizes = [1, 128], strides = [1, 1]} : vector<3x128xf32> to vector<1x128xf32>
    %135 = vector.broadcast %134 : vector<1x128xf32> to vector<8x128xf32>
    %136 = arith.mulf %133, %135 : vector<8x128xf32>
    %137 = vector.extract_strided_slice %37 {offsets = [1, 0], sizes = [1, 128], strides = [1, 1]} : vector<3x128xf32> to vector<1x128xf32>
    %138 = vector.broadcast %137 : vector<1x128xf32> to vector<8x128xf32>
    %139 = arith.mulf %132, %138 : vector<8x128xf32>
    %c126_i32_47 = arith.constant 126 : i32
    %140 = tpu.dynamic_rotate %132 by %c126_i32_47 dim 1 : vector<8x128xf32>, i32 -> vector<8x128xf32>
    %141 = vector.extract_strided_slice %37 {offsets = [2, 0], sizes = [1, 128], strides = [1, 1]} : vector<3x128xf32> to vector<1x128xf32>
    %142 = vector.broadcast %141 : vector<1x128xf32> to vector<8x128xf32>
    %143 = arith.mulf %140, %142 : vector<8x128xf32>
    %144 = tpu.concatenate %136, %139, %143 in 0 : vector<8x128xf32>, vector<8x128xf32>, vector<8x128xf32> -> vector<24x128xf32>
    %c2 = arith.constant 2 : index
    %c0_48 = arith.constant 0 : index
    %c0_49 = arith.constant 0 : index
    %145 = vector.load %arg9[%c2, %c0_48, %c0_49] : memref<7x8x24xf32, #tpu.memory_space<vmem>>, vector<1x8x24xf32>
    %146 = vector.shape_cast %145 : vector<1x8x24xf32> to vector<8x24xf32>
    %cst_50 = arith.constant dense<0.000000e+00> : vector<8x128xf32>
    %147 = tpu.matmul %146, %144, %cst_50 {dimension_numbers = #tpu.dot_dimension_numbers<[1], [0], [0], [1], [0, 0, 1, 1], [], []>} : vector<8x24xf32>, vector<24x128xf32>, vector<8x128xf32> -> vector<8x128xf32>
    %148 = vector.extract_strided_slice %34 {offsets = [0, 2], sizes = [8, 1], strides = [1, 1]} : vector<8x7xf32> to vector<8x1xf32>
    %149 = vector.broadcast %148 : vector<8x1xf32> to vector<8x128xf32>
    %150 = arith.addf %147, %149 : vector<8x128xf32>
    %cst_51 = arith.constant 0.000000e+00 : f32
    %151 = vector.broadcast %cst_51 : f32 to vector<8x128xf32>
    %152 = arith.maximumf %150, %151 : vector<8x128xf32>
    %153 = vector.extract_strided_slice %35 {offsets = [0, 2], sizes = [8, 1], strides = [1, 1]} : vector<8x7xf32> to vector<8x1xf32>
    %154 = vector.extract_strided_slice %36 {offsets = [0, 2], sizes = [8, 1], strides = [1, 1]} : vector<8x7xf32> to vector<8x1xf32>
    %155 = vector.broadcast %0 : vector<1x128xf32> to vector<8x128xf32>
    %156 = arith.mulf %152, %155 : vector<8x128xf32>
    %cst_52 = arith.constant dense<0.000000e+00> : vector<8xf32>
    %157 = vector.multi_reduction <add>, %156, %cst_52 [1] : vector<8x128xf32> to vector<8xf32>
    %158 = vector.shape_cast %157 : vector<8xf32> to vector<8x1xf32>
    %cst_53 = arith.constant 3.125000e-02 : f32
    %159 = vector.broadcast %cst_53 : f32 to vector<8x1xf32>
    %160 = arith.mulf %158, %159 : vector<8x1xf32>
    %161 = vector.broadcast %160 : vector<8x1xf32> to vector<8x128xf32>
    %162 = arith.subf %152, %161 : vector<8x128xf32>
    %163 = vector.broadcast %0 : vector<1x128xf32> to vector<8x128xf32>
    %164 = arith.mulf %162, %163 : vector<8x128xf32>
    %165 = arith.mulf %164, %164 : vector<8x128xf32>
    %cst_54 = arith.constant dense<0.000000e+00> : vector<8xf32>
    %166 = vector.multi_reduction <add>, %165, %cst_54 [1] : vector<8x128xf32> to vector<8xf32>
    %167 = vector.shape_cast %166 : vector<8xf32> to vector<8x1xf32>
    %cst_55 = arith.constant 3.125000e-02 : f32
    %168 = vector.broadcast %cst_55 : f32 to vector<8x1xf32>
    %169 = arith.mulf %167, %168 : vector<8x1xf32>
    %cst_56 = arith.constant 9.99999974E-6 : f32
    %170 = vector.broadcast %cst_56 : f32 to vector<8x1xf32>
    %171 = arith.addf %169, %170 : vector<8x1xf32>
    %172 = math.rsqrt %171 : vector<8x1xf32>
    %173 = arith.mulf %172, %153 : vector<8x1xf32>
    %174 = vector.broadcast %173 : vector<8x1xf32> to vector<8x128xf32>
    %175 = arith.mulf %162, %174 : vector<8x128xf32>
    %176 = vector.broadcast %154 : vector<8x1xf32> to vector<8x128xf32>
    %177 = arith.addf %175, %176 : vector<8x128xf32>
    %178 = vector.extract_strided_slice %33 {offsets = [24, 0], sizes = [8, 128], strides = [1, 1]} : vector<64x128xf32> to vector<8x128xf32>
    %179 = arith.addf %177, %178 : vector<8x128xf32>
    %c2_i32_57 = arith.constant 2 : i32
    %180 = tpu.dynamic_rotate %179 by %c2_i32_57 dim 1 : vector<8x128xf32>, i32 -> vector<8x128xf32>
    %181 = vector.extract_strided_slice %37 {offsets = [0, 0], sizes = [1, 128], strides = [1, 1]} : vector<3x128xf32> to vector<1x128xf32>
    %182 = vector.broadcast %181 : vector<1x128xf32> to vector<8x128xf32>
    %183 = arith.mulf %180, %182 : vector<8x128xf32>
    %184 = vector.extract_strided_slice %37 {offsets = [1, 0], sizes = [1, 128], strides = [1, 1]} : vector<3x128xf32> to vector<1x128xf32>
    %185 = vector.broadcast %184 : vector<1x128xf32> to vector<8x128xf32>
    %186 = arith.mulf %179, %185 : vector<8x128xf32>
    %c126_i32_58 = arith.constant 126 : i32
    %187 = tpu.dynamic_rotate %179 by %c126_i32_58 dim 1 : vector<8x128xf32>, i32 -> vector<8x128xf32>
    %188 = vector.extract_strided_slice %37 {offsets = [2, 0], sizes = [1, 128], strides = [1, 1]} : vector<3x128xf32> to vector<1x128xf32>
    %189 = vector.broadcast %188 : vector<1x128xf32> to vector<8x128xf32>
    %190 = arith.mulf %187, %189 : vector<8x128xf32>
    %191 = tpu.concatenate %183, %186, %190 in 0 : vector<8x128xf32>, vector<8x128xf32>, vector<8x128xf32> -> vector<24x128xf32>
    %c3 = arith.constant 3 : index
    %c0_59 = arith.constant 0 : index
    %c0_60 = arith.constant 0 : index
    %192 = vector.load %arg9[%c3, %c0_59, %c0_60] : memref<7x8x24xf32, #tpu.memory_space<vmem>>, vector<1x8x24xf32>
    %193 = vector.shape_cast %192 : vector<1x8x24xf32> to vector<8x24xf32>
    %cst_61 = arith.constant dense<0.000000e+00> : vector<8x128xf32>
    %194 = tpu.matmul %193, %191, %cst_61 {dimension_numbers = #tpu.dot_dimension_numbers<[1], [0], [0], [1], [0, 0, 1, 1], [], []>} : vector<8x24xf32>, vector<24x128xf32>, vector<8x128xf32> -> vector<8x128xf32>
    %195 = vector.extract_strided_slice %34 {offsets = [0, 3], sizes = [8, 1], strides = [1, 1]} : vector<8x7xf32> to vector<8x1xf32>
    %196 = vector.broadcast %195 : vector<8x1xf32> to vector<8x128xf32>
    %197 = arith.addf %194, %196 : vector<8x128xf32>
    %cst_62 = arith.constant 0.000000e+00 : f32
    %198 = vector.broadcast %cst_62 : f32 to vector<8x128xf32>
    %199 = arith.maximumf %197, %198 : vector<8x128xf32>
    %200 = vector.extract_strided_slice %35 {offsets = [0, 3], sizes = [8, 1], strides = [1, 1]} : vector<8x7xf32> to vector<8x1xf32>
    %201 = vector.extract_strided_slice %36 {offsets = [0, 3], sizes = [8, 1], strides = [1, 1]} : vector<8x7xf32> to vector<8x1xf32>
    %202 = vector.broadcast %0 : vector<1x128xf32> to vector<8x128xf32>
    %203 = arith.mulf %199, %202 : vector<8x128xf32>
    %cst_63 = arith.constant dense<0.000000e+00> : vector<8xf32>
    %204 = vector.multi_reduction <add>, %203, %cst_63 [1] : vector<8x128xf32> to vector<8xf32>
    %205 = vector.shape_cast %204 : vector<8xf32> to vector<8x1xf32>
    %cst_64 = arith.constant 3.125000e-02 : f32
    %206 = vector.broadcast %cst_64 : f32 to vector<8x1xf32>
    %207 = arith.mulf %205, %206 : vector<8x1xf32>
    %208 = vector.broadcast %207 : vector<8x1xf32> to vector<8x128xf32>
    %209 = arith.subf %199, %208 : vector<8x128xf32>
    %210 = vector.broadcast %0 : vector<1x128xf32> to vector<8x128xf32>
    %211 = arith.mulf %209, %210 : vector<8x128xf32>
    %212 = arith.mulf %211, %211 : vector<8x128xf32>
    %cst_65 = arith.constant dense<0.000000e+00> : vector<8xf32>
    %213 = vector.multi_reduction <add>, %212, %cst_65 [1] : vector<8x128xf32> to vector<8xf32>
    %214 = vector.shape_cast %213 : vector<8xf32> to vector<8x1xf32>
    %cst_66 = arith.constant 3.125000e-02 : f32
    %215 = vector.broadcast %cst_66 : f32 to vector<8x1xf32>
    %216 = arith.mulf %214, %215 : vector<8x1xf32>
    %cst_67 = arith.constant 9.99999974E-6 : f32
    %217 = vector.broadcast %cst_67 : f32 to vector<8x1xf32>
    %218 = arith.addf %216, %217 : vector<8x1xf32>
    %219 = math.rsqrt %218 : vector<8x1xf32>
    %220 = arith.mulf %219, %200 : vector<8x1xf32>
    %221 = vector.broadcast %220 : vector<8x1xf32> to vector<8x128xf32>
    %222 = arith.mulf %209, %221 : vector<8x128xf32>
    %223 = vector.broadcast %201 : vector<8x1xf32> to vector<8x128xf32>
    %224 = arith.addf %222, %223 : vector<8x128xf32>
    %225 = vector.extract_strided_slice %33 {offsets = [32, 0], sizes = [8, 128], strides = [1, 1]} : vector<64x128xf32> to vector<8x128xf32>
    %226 = arith.addf %224, %225 : vector<8x128xf32>
    %c2_i32_68 = arith.constant 2 : i32
    %227 = tpu.dynamic_rotate %226 by %c2_i32_68 dim 1 : vector<8x128xf32>, i32 -> vector<8x128xf32>
    %228 = vector.extract_strided_slice %37 {offsets = [0, 0], sizes = [1, 128], strides = [1, 1]} : vector<3x128xf32> to vector<1x128xf32>
    %229 = vector.broadcast %228 : vector<1x128xf32> to vector<8x128xf32>
    %230 = arith.mulf %227, %229 : vector<8x128xf32>
    %231 = vector.extract_strided_slice %37 {offsets = [1, 0], sizes = [1, 128], strides = [1, 1]} : vector<3x128xf32> to vector<1x128xf32>
    %232 = vector.broadcast %231 : vector<1x128xf32> to vector<8x128xf32>
    %233 = arith.mulf %226, %232 : vector<8x128xf32>
    %c126_i32_69 = arith.constant 126 : i32
    %234 = tpu.dynamic_rotate %226 by %c126_i32_69 dim 1 : vector<8x128xf32>, i32 -> vector<8x128xf32>
    %235 = vector.extract_strided_slice %37 {offsets = [2, 0], sizes = [1, 128], strides = [1, 1]} : vector<3x128xf32> to vector<1x128xf32>
    %236 = vector.broadcast %235 : vector<1x128xf32> to vector<8x128xf32>
    %237 = arith.mulf %234, %236 : vector<8x128xf32>
    %238 = tpu.concatenate %230, %233, %237 in 0 : vector<8x128xf32>, vector<8x128xf32>, vector<8x128xf32> -> vector<24x128xf32>
    %c4 = arith.constant 4 : index
    %c0_70 = arith.constant 0 : index
    %c0_71 = arith.constant 0 : index
    %239 = vector.load %arg9[%c4, %c0_70, %c0_71] : memref<7x8x24xf32, #tpu.memory_space<vmem>>, vector<1x8x24xf32>
    %240 = vector.shape_cast %239 : vector<1x8x24xf32> to vector<8x24xf32>
    %cst_72 = arith.constant dense<0.000000e+00> : vector<8x128xf32>
    %241 = tpu.matmul %240, %238, %cst_72 {dimension_numbers = #tpu.dot_dimension_numbers<[1], [0], [0], [1], [0, 0, 1, 1], [], []>} : vector<8x24xf32>, vector<24x128xf32>, vector<8x128xf32> -> vector<8x128xf32>
    %242 = vector.extract_strided_slice %34 {offsets = [0, 4], sizes = [8, 1], strides = [1, 1]} : vector<8x7xf32> to vector<8x1xf32>
    %243 = vector.broadcast %242 : vector<8x1xf32> to vector<8x128xf32>
    %244 = arith.addf %241, %243 : vector<8x128xf32>
    %cst_73 = arith.constant 0.000000e+00 : f32
    %245 = vector.broadcast %cst_73 : f32 to vector<8x128xf32>
    %246 = arith.maximumf %244, %245 : vector<8x128xf32>
    %247 = vector.extract_strided_slice %35 {offsets = [0, 4], sizes = [8, 1], strides = [1, 1]} : vector<8x7xf32> to vector<8x1xf32>
    %248 = vector.extract_strided_slice %36 {offsets = [0, 4], sizes = [8, 1], strides = [1, 1]} : vector<8x7xf32> to vector<8x1xf32>
    %249 = vector.broadcast %0 : vector<1x128xf32> to vector<8x128xf32>
    %250 = arith.mulf %246, %249 : vector<8x128xf32>
    %cst_74 = arith.constant dense<0.000000e+00> : vector<8xf32>
    %251 = vector.multi_reduction <add>, %250, %cst_74 [1] : vector<8x128xf32> to vector<8xf32>
    %252 = vector.shape_cast %251 : vector<8xf32> to vector<8x1xf32>
    %cst_75 = arith.constant 3.125000e-02 : f32
    %253 = vector.broadcast %cst_75 : f32 to vector<8x1xf32>
    %254 = arith.mulf %252, %253 : vector<8x1xf32>
    %255 = vector.broadcast %254 : vector<8x1xf32> to vector<8x128xf32>
    %256 = arith.subf %246, %255 : vector<8x128xf32>
    %257 = vector.broadcast %0 : vector<1x128xf32> to vector<8x128xf32>
    %258 = arith.mulf %256, %257 : vector<8x128xf32>
    %259 = arith.mulf %258, %258 : vector<8x128xf32>
    %cst_76 = arith.constant dense<0.000000e+00> : vector<8xf32>
    %260 = vector.multi_reduction <add>, %259, %cst_76 [1] : vector<8x128xf32> to vector<8xf32>
    %261 = vector.shape_cast %260 : vector<8xf32> to vector<8x1xf32>
    %cst_77 = arith.constant 3.125000e-02 : f32
    %262 = vector.broadcast %cst_77 : f32 to vector<8x1xf32>
    %263 = arith.mulf %261, %262 : vector<8x1xf32>
    %cst_78 = arith.constant 9.99999974E-6 : f32
    %264 = vector.broadcast %cst_78 : f32 to vector<8x1xf32>
    %265 = arith.addf %263, %264 : vector<8x1xf32>
    %266 = math.rsqrt %265 : vector<8x1xf32>
    %267 = arith.mulf %266, %247 : vector<8x1xf32>
    %268 = vector.broadcast %267 : vector<8x1xf32> to vector<8x128xf32>
    %269 = arith.mulf %256, %268 : vector<8x128xf32>
    %270 = vector.broadcast %248 : vector<8x1xf32> to vector<8x128xf32>
    %271 = arith.addf %269, %270 : vector<8x128xf32>
    %272 = vector.extract_strided_slice %33 {offsets = [40, 0], sizes = [8, 128], strides = [1, 1]} : vector<64x128xf32> to vector<8x128xf32>
    %273 = arith.addf %271, %272 : vector<8x128xf32>
    %c2_i32_79 = arith.constant 2 : i32
    %274 = tpu.dynamic_rotate %273 by %c2_i32_79 dim 1 : vector<8x128xf32>, i32 -> vector<8x128xf32>
    %275 = vector.extract_strided_slice %37 {offsets = [0, 0], sizes = [1, 128], strides = [1, 1]} : vector<3x128xf32> to vector<1x128xf32>
    %276 = vector.broadcast %275 : vector<1x128xf32> to vector<8x128xf32>
    %277 = arith.mulf %274, %276 : vector<8x128xf32>
    %278 = vector.extract_strided_slice %37 {offsets = [1, 0], sizes = [1, 128], strides = [1, 1]} : vector<3x128xf32> to vector<1x128xf32>
    %279 = vector.broadcast %278 : vector<1x128xf32> to vector<8x128xf32>
    %280 = arith.mulf %273, %279 : vector<8x128xf32>
    %c126_i32_80 = arith.constant 126 : i32
    %281 = tpu.dynamic_rotate %273 by %c126_i32_80 dim 1 : vector<8x128xf32>, i32 -> vector<8x128xf32>
    %282 = vector.extract_strided_slice %37 {offsets = [2, 0], sizes = [1, 128], strides = [1, 1]} : vector<3x128xf32> to vector<1x128xf32>
    %283 = vector.broadcast %282 : vector<1x128xf32> to vector<8x128xf32>
    %284 = arith.mulf %281, %283 : vector<8x128xf32>
    %285 = tpu.concatenate %277, %280, %284 in 0 : vector<8x128xf32>, vector<8x128xf32>, vector<8x128xf32> -> vector<24x128xf32>
    %c5 = arith.constant 5 : index
    %c0_81 = arith.constant 0 : index
    %c0_82 = arith.constant 0 : index
    %286 = vector.load %arg9[%c5, %c0_81, %c0_82] : memref<7x8x24xf32, #tpu.memory_space<vmem>>, vector<1x8x24xf32>
    %287 = vector.shape_cast %286 : vector<1x8x24xf32> to vector<8x24xf32>
    %cst_83 = arith.constant dense<0.000000e+00> : vector<8x128xf32>
    %288 = tpu.matmul %287, %285, %cst_83 {dimension_numbers = #tpu.dot_dimension_numbers<[1], [0], [0], [1], [0, 0, 1, 1], [], []>} : vector<8x24xf32>, vector<24x128xf32>, vector<8x128xf32> -> vector<8x128xf32>
    %289 = vector.extract_strided_slice %34 {offsets = [0, 5], sizes = [8, 1], strides = [1, 1]} : vector<8x7xf32> to vector<8x1xf32>
    %290 = vector.broadcast %289 : vector<8x1xf32> to vector<8x128xf32>
    %291 = arith.addf %288, %290 : vector<8x128xf32>
    %cst_84 = arith.constant 0.000000e+00 : f32
    %292 = vector.broadcast %cst_84 : f32 to vector<8x128xf32>
    %293 = arith.maximumf %291, %292 : vector<8x128xf32>
    %294 = vector.extract_strided_slice %35 {offsets = [0, 5], sizes = [8, 1], strides = [1, 1]} : vector<8x7xf32> to vector<8x1xf32>
    %295 = vector.extract_strided_slice %36 {offsets = [0, 5], sizes = [8, 1], strides = [1, 1]} : vector<8x7xf32> to vector<8x1xf32>
    %296 = vector.broadcast %0 : vector<1x128xf32> to vector<8x128xf32>
    %297 = arith.mulf %293, %296 : vector<8x128xf32>
    %cst_85 = arith.constant dense<0.000000e+00> : vector<8xf32>
    %298 = vector.multi_reduction <add>, %297, %cst_85 [1] : vector<8x128xf32> to vector<8xf32>
    %299 = vector.shape_cast %298 : vector<8xf32> to vector<8x1xf32>
    %cst_86 = arith.constant 3.125000e-02 : f32
    %300 = vector.broadcast %cst_86 : f32 to vector<8x1xf32>
    %301 = arith.mulf %299, %300 : vector<8x1xf32>
    %302 = vector.broadcast %301 : vector<8x1xf32> to vector<8x128xf32>
    %303 = arith.subf %293, %302 : vector<8x128xf32>
    %304 = vector.broadcast %0 : vector<1x128xf32> to vector<8x128xf32>
    %305 = arith.mulf %303, %304 : vector<8x128xf32>
    %306 = arith.mulf %305, %305 : vector<8x128xf32>
    %cst_87 = arith.constant dense<0.000000e+00> : vector<8xf32>
    %307 = vector.multi_reduction <add>, %306, %cst_87 [1] : vector<8x128xf32> to vector<8xf32>
    %308 = vector.shape_cast %307 : vector<8xf32> to vector<8x1xf32>
    %cst_88 = arith.constant 3.125000e-02 : f32
    %309 = vector.broadcast %cst_88 : f32 to vector<8x1xf32>
    %310 = arith.mulf %308, %309 : vector<8x1xf32>
    %cst_89 = arith.constant 9.99999974E-6 : f32
    %311 = vector.broadcast %cst_89 : f32 to vector<8x1xf32>
    %312 = arith.addf %310, %311 : vector<8x1xf32>
    %313 = math.rsqrt %312 : vector<8x1xf32>
    %314 = arith.mulf %313, %294 : vector<8x1xf32>
    %315 = vector.broadcast %314 : vector<8x1xf32> to vector<8x128xf32>
    %316 = arith.mulf %303, %315 : vector<8x128xf32>
    %317 = vector.broadcast %295 : vector<8x1xf32> to vector<8x128xf32>
    %318 = arith.addf %316, %317 : vector<8x128xf32>
    %319 = vector.extract_strided_slice %33 {offsets = [48, 0], sizes = [8, 128], strides = [1, 1]} : vector<64x128xf32> to vector<8x128xf32>
    %320 = arith.addf %318, %319 : vector<8x128xf32>
    %c2_i32_90 = arith.constant 2 : i32
    %321 = tpu.dynamic_rotate %320 by %c2_i32_90 dim 1 : vector<8x128xf32>, i32 -> vector<8x128xf32>
    %322 = vector.extract_strided_slice %37 {offsets = [0, 0], sizes = [1, 128], strides = [1, 1]} : vector<3x128xf32> to vector<1x128xf32>
    %323 = vector.broadcast %322 : vector<1x128xf32> to vector<8x128xf32>
    %324 = arith.mulf %321, %323 : vector<8x128xf32>
    %325 = vector.extract_strided_slice %37 {offsets = [1, 0], sizes = [1, 128], strides = [1, 1]} : vector<3x128xf32> to vector<1x128xf32>
    %326 = vector.broadcast %325 : vector<1x128xf32> to vector<8x128xf32>
    %327 = arith.mulf %320, %326 : vector<8x128xf32>
    %c126_i32_91 = arith.constant 126 : i32
    %328 = tpu.dynamic_rotate %320 by %c126_i32_91 dim 1 : vector<8x128xf32>, i32 -> vector<8x128xf32>
    %329 = vector.extract_strided_slice %37 {offsets = [2, 0], sizes = [1, 128], strides = [1, 1]} : vector<3x128xf32> to vector<1x128xf32>
    %330 = vector.broadcast %329 : vector<1x128xf32> to vector<8x128xf32>
    %331 = arith.mulf %328, %330 : vector<8x128xf32>
    %332 = tpu.concatenate %324, %327, %331 in 0 : vector<8x128xf32>, vector<8x128xf32>, vector<8x128xf32> -> vector<24x128xf32>
    %c6 = arith.constant 6 : index
    %c0_92 = arith.constant 0 : index
    %c0_93 = arith.constant 0 : index
    %333 = vector.load %arg9[%c6, %c0_92, %c0_93] : memref<7x8x24xf32, #tpu.memory_space<vmem>>, vector<1x8x24xf32>
    %334 = vector.shape_cast %333 : vector<1x8x24xf32> to vector<8x24xf32>
    %cst_94 = arith.constant dense<0.000000e+00> : vector<8x128xf32>
    %335 = tpu.matmul %334, %332, %cst_94 {dimension_numbers = #tpu.dot_dimension_numbers<[1], [0], [0], [1], [0, 0, 1, 1], [], []>} : vector<8x24xf32>, vector<24x128xf32>, vector<8x128xf32> -> vector<8x128xf32>
    %336 = vector.extract_strided_slice %34 {offsets = [0, 6], sizes = [8, 1], strides = [1, 1]} : vector<8x7xf32> to vector<8x1xf32>
    %337 = vector.broadcast %336 : vector<8x1xf32> to vector<8x128xf32>
    %338 = arith.addf %335, %337 : vector<8x128xf32>
    %cst_95 = arith.constant 0.000000e+00 : f32
    %339 = vector.broadcast %cst_95 : f32 to vector<8x128xf32>
    %340 = arith.maximumf %338, %339 : vector<8x128xf32>
    %341 = vector.extract_strided_slice %35 {offsets = [0, 6], sizes = [8, 1], strides = [1, 1]} : vector<8x7xf32> to vector<8x1xf32>
    %342 = vector.extract_strided_slice %36 {offsets = [0, 6], sizes = [8, 1], strides = [1, 1]} : vector<8x7xf32> to vector<8x1xf32>
    %343 = vector.broadcast %0 : vector<1x128xf32> to vector<8x128xf32>
    %344 = arith.mulf %340, %343 : vector<8x128xf32>
    %cst_96 = arith.constant dense<0.000000e+00> : vector<8xf32>
    %345 = vector.multi_reduction <add>, %344, %cst_96 [1] : vector<8x128xf32> to vector<8xf32>
    %346 = vector.shape_cast %345 : vector<8xf32> to vector<8x1xf32>
    %cst_97 = arith.constant 3.125000e-02 : f32
    %347 = vector.broadcast %cst_97 : f32 to vector<8x1xf32>
    %348 = arith.mulf %346, %347 : vector<8x1xf32>
    %349 = vector.broadcast %348 : vector<8x1xf32> to vector<8x128xf32>
    %350 = arith.subf %340, %349 : vector<8x128xf32>
    %351 = vector.broadcast %0 : vector<1x128xf32> to vector<8x128xf32>
    %352 = arith.mulf %350, %351 : vector<8x128xf32>
    %353 = arith.mulf %352, %352 : vector<8x128xf32>
    %cst_98 = arith.constant dense<0.000000e+00> : vector<8xf32>
    %354 = vector.multi_reduction <add>, %353, %cst_98 [1] : vector<8x128xf32> to vector<8xf32>
    %355 = vector.shape_cast %354 : vector<8xf32> to vector<8x1xf32>
    %cst_99 = arith.constant 3.125000e-02 : f32
    %356 = vector.broadcast %cst_99 : f32 to vector<8x1xf32>
    %357 = arith.mulf %355, %356 : vector<8x1xf32>
    %cst_100 = arith.constant 9.99999974E-6 : f32
    %358 = vector.broadcast %cst_100 : f32 to vector<8x1xf32>
    %359 = arith.addf %357, %358 : vector<8x1xf32>
    %360 = math.rsqrt %359 : vector<8x1xf32>
    %361 = arith.mulf %360, %341 : vector<8x1xf32>
    %362 = vector.broadcast %361 : vector<8x1xf32> to vector<8x128xf32>
    %363 = arith.mulf %350, %362 : vector<8x128xf32>
    %364 = vector.broadcast %342 : vector<8x1xf32> to vector<8x128xf32>
    %365 = arith.addf %363, %364 : vector<8x128xf32>
    %366 = vector.extract_strided_slice %33 {offsets = [56, 0], sizes = [8, 128], strides = [1, 1]} : vector<64x128xf32> to vector<8x128xf32>
    %367 = tpu.concatenate %83, %130, %177, %224, %271, %318, %365, %366 in 0 : vector<8x128xf32>, vector<8x128xf32>, vector<8x128xf32>, vector<8x128xf32>, vector<8x128xf32>, vector<8x128xf32>, vector<8x128xf32>, vector<8x128xf32> -> vector<64x128xf32>
    %c0_101 = arith.constant 0 : index
    %c0_102 = arith.constant 0 : index
    %368 = vector.load %arg13[%c0_101, %c0_102] : memref<64x64xf32, #tpu.memory_space<vmem>>, vector<64x64xf32>
    %cst_103 = arith.constant dense<0.000000e+00> : vector<64x128xf32>
    %369 = tpu.matmul %368, %367, %cst_103 {dimension_numbers = #tpu.dot_dimension_numbers<[1], [0], [0], [1], [0, 0, 1, 1], [], []>} : vector<64x64xf32>, vector<64x128xf32>, vector<64x128xf32> -> vector<64x128xf32>
    %c0_104 = arith.constant 0 : index
    %c0_105 = arith.constant 0 : index
    %370 = vector.load %arg14[%c0_104, %c0_105] : memref<64x1xf32, #tpu.memory_space<vmem>>, vector<64x1xf32>
    %371 = vector.broadcast %370 : vector<64x1xf32> to vector<64x128xf32>
    %372 = arith.addf %369, %371 : vector<64x128xf32>
    %cst_106 = arith.constant 0.000000e+00 : f32
    %373 = vector.broadcast %cst_106 : f32 to vector<64x128xf32>
    %374 = arith.maximumf %372, %373 : vector<64x128xf32>
    %c0_107 = arith.constant 0 : index
    %c0_108 = arith.constant 0 : index
    %375 = vector.load %arg15[%c0_107, %c0_108] : memref<64x1xf32, #tpu.memory_space<vmem>>, vector<64x1xf32>
    %c0_109 = arith.constant 0 : index
    %c0_110 = arith.constant 0 : index
    %376 = vector.load %arg16[%c0_109, %c0_110] : memref<64x1xf32, #tpu.memory_space<vmem>>, vector<64x1xf32>
    %377 = vector.broadcast %0 : vector<1x128xf32> to vector<64x128xf32>
    %378 = arith.mulf %374, %377 : vector<64x128xf32>
    %cst_111 = arith.constant dense<0.000000e+00> : vector<64xf32>
    %379 = vector.multi_reduction <add>, %378, %cst_111 [1] : vector<64x128xf32> to vector<64xf32>
    %380 = vector.shape_cast %379 : vector<64xf32> to vector<64x1xf32>
    %cst_112 = arith.constant 3.125000e-02 : f32
    %381 = vector.broadcast %cst_112 : f32 to vector<64x1xf32>
    %382 = arith.mulf %380, %381 : vector<64x1xf32>
    %383 = vector.broadcast %382 : vector<64x1xf32> to vector<64x128xf32>
    %384 = arith.subf %374, %383 : vector<64x128xf32>
    %385 = vector.broadcast %0 : vector<1x128xf32> to vector<64x128xf32>
    %386 = arith.mulf %384, %385 : vector<64x128xf32>
    %387 = arith.mulf %386, %386 : vector<64x128xf32>
    %cst_113 = arith.constant dense<0.000000e+00> : vector<64xf32>
    %388 = vector.multi_reduction <add>, %387, %cst_113 [1] : vector<64x128xf32> to vector<64xf32>
    %389 = vector.shape_cast %388 : vector<64xf32> to vector<64x1xf32>
    %cst_114 = arith.constant 3.125000e-02 : f32
    %390 = vector.broadcast %cst_114 : f32 to vector<64x1xf32>
    %391 = arith.mulf %389, %390 : vector<64x1xf32>
    %cst_115 = arith.constant 9.99999974E-6 : f32
    %392 = vector.broadcast %cst_115 : f32 to vector<64x1xf32>
    %393 = arith.addf %391, %392 : vector<64x1xf32>
    %394 = math.rsqrt %393 : vector<64x1xf32>
    %395 = arith.mulf %394, %375 : vector<64x1xf32>
    %396 = vector.broadcast %395 : vector<64x1xf32> to vector<64x128xf32>
    %397 = arith.mulf %384, %396 : vector<64x128xf32>
    %398 = vector.broadcast %376 : vector<64x1xf32> to vector<64x128xf32>
    %399 = arith.addf %397, %398 : vector<64x128xf32>
    %c0_116 = arith.constant 0 : index
    %c0_117 = arith.constant 0 : index
    %400 = vector.load %arg3[%c0_116, %c0_117] : memref<128x2xf32, #tpu.memory_space<vmem>>, vector<128x2xf32>
    %cst_118 = arith.constant dense<0.000000e+00> : vector<64x2xf32>
    %401 = tpu.matmul %399, %400, %cst_118 {dimension_numbers = #tpu.dot_dimension_numbers<[1], [0], [0], [1], [0, 0, 1, 1], [], []>} : vector<64x128xf32>, vector<128x2xf32>, vector<64x2xf32> -> vector<64x2xf32>
    %c0_119 = arith.constant 0 : index
    %c0_120 = arith.constant 0 : index
    %402 = vector.load %arg17[%c0_119, %c0_120] : memref<128x64xf32, #tpu.memory_space<vmem>>, vector<128x64xf32>
    %cst_121 = arith.constant dense<0.000000e+00> : vector<128x2xf32>
    %403 = tpu.matmul %402, %401, %cst_121 {dimension_numbers = #tpu.dot_dimension_numbers<[1], [0], [0], [1], [0, 0, 1, 1], [], []>} : vector<128x64xf32>, vector<64x2xf32>, vector<128x2xf32> -> vector<128x2xf32>
    %c0_122 = arith.constant 0 : index
    %c0_123 = arith.constant 0 : index
    %404 = vector.load %arg18[%c0_122, %c0_123] : memref<128x1xf32, #tpu.memory_space<vmem>>, vector<128x1xf32>
    %405 = vector.broadcast %404 : vector<128x1xf32> to vector<128x2xf32>
    %406 = arith.addf %403, %405 : vector<128x2xf32>
    %cst_124 = arith.constant 0.000000e+00 : f32
    %407 = vector.broadcast %cst_124 : f32 to vector<128x2xf32>
    %408 = arith.maximumf %406, %407 : vector<128x2xf32>
    %c0_125 = arith.constant 0 : index
    %c0_126 = arith.constant 0 : index
    %409 = vector.load %arg19[%c0_125, %c0_126] : memref<64x128xf32, #tpu.memory_space<vmem>>, vector<64x128xf32>
    %cst_127 = arith.constant dense<0.000000e+00> : vector<64x2xf32>
    %410 = tpu.matmul %409, %408, %cst_127 {dimension_numbers = #tpu.dot_dimension_numbers<[1], [0], [0], [1], [0, 0, 1, 1], [], []>} : vector<64x128xf32>, vector<128x2xf32>, vector<64x2xf32> -> vector<64x2xf32>
    %c0_128 = arith.constant 0 : index
    %c0_129 = arith.constant 0 : index
    %411 = vector.load %arg20[%c0_128, %c0_129] : memref<64x1xf32, #tpu.memory_space<vmem>>, vector<64x1xf32>
    %412 = vector.broadcast %411 : vector<64x1xf32> to vector<64x2xf32>
    %413 = arith.addf %410, %412 : vector<64x2xf32>
    %cst_130 = arith.constant 0.000000e+00 : f32
    %414 = vector.broadcast %cst_130 : f32 to vector<64x2xf32>
    %415 = arith.subf %414, %413 : vector<64x2xf32>
    %416 = math.exp %415 : vector<64x2xf32>
    %cst_131 = arith.constant 1.000000e+00 : f32
    %417 = vector.broadcast %cst_131 : f32 to vector<64x2xf32>
    %418 = arith.addf %417, %416 : vector<64x2xf32>
    %cst_132 = arith.constant 1.000000e+00 : f32
    %419 = vector.broadcast %cst_132 : f32 to vector<64x2xf32>
    %420 = arith.divf %419, %418 : vector<64x2xf32>
    %c0_133 = arith.constant 0 : index
    %c0_134 = arith.constant 0 : index
    %421 = vector.load %arg4[%c0_133, %c0_134] : memref<2x128xf32, #tpu.memory_space<vmem>>, vector<2x128xf32>
    %cst_135 = arith.constant dense<0.000000e+00> : vector<64x128xf32>
    %422 = tpu.matmul %420, %421, %cst_135 {dimension_numbers = #tpu.dot_dimension_numbers<[1], [0], [0], [1], [0, 0, 1, 1], [], []>} : vector<64x2xf32>, vector<2x128xf32>, vector<64x128xf32> -> vector<64x128xf32>
    %423 = arith.mulf %399, %422 : vector<64x128xf32>
    %c0_136 = arith.constant 0 : index
    %c0_137 = arith.constant 0 : index
    %424 = vector.load %arg0[%c0_136, %c0_137] : memref<64x128xf32, #tpu.memory_space<vmem>>, vector<64x128xf32>
    %425 = arith.addf %423, %424 : vector<64x128xf32>
    %c0_138 = arith.constant 0 : index
    %c0_139 = arith.constant 0 : index
    %426 = vector.load %arg21[%c0_138, %c0_139] : memref<64x128xf32, #tpu.memory_space<vmem>>, vector<64x128xf32>
    tpu.vector_store %arg21[%c0_138, %c0_139], %425 {strides = array<i32>} : memref<64x128xf32, #tpu.memory_space<vmem>>, vector<64x128xf32>,
    return
  }
}

</mosaic_0001>

<bundles_post_ra>
// kernel: tpu_custom_call.1
= control target key start
LH: loop header
LB: loop body
LE: loop exit
PB: predicated region body
PF: predicated region fallthrough
CT: control target
= control target key end

     0   :  { %s4180_s0 = inlined_call_operand.vmem [shape: f32[64,128], index: 0, kind: input, shape index: {}]   ;;  %s4181_s1 = inlined_call_operand.vmem [shape: f32[1,128], index: 1, kind: input, shape index: {}]   ;;  %s4182_s2 = inlined_call_operand.vmem [shape: f32[3,128], index: 2, kind: input, shape index: {}]   ;;  %s4183_s3 = inlined_call_operand.vmem [shape: f32[128,2], index: 3, kind: input, shape index: {}]   ;;  %s4184_s4 = inlined_call_operand.vmem [shape: f32[2,128], index: 4, kind: input, shape index: {}]   ;;  %s4185_s5 = inlined_call_operand.vmem [shape: f32[64,64], index: 5, kind: input, shape index: {}]   ;;  %s4186_s6 = inlined_call_operand.vmem [shape: f32[64,1], index: 6, kind: input, shape index: {}]   ;;  %s4187_s7 = inlined_call_operand.vmem [shape: f32[64,1], index: 7, kind: input, shape index: {}]   ;;  %s4188_s8 = inlined_call_operand.vmem [shape: f32[64,1], index: 8, kind: input, shape index: {}]   ;;  %s4189_s9 = inlined_call_operand.vmem [shape: f32[7,8,24], index: 9, kind: input, shape index: {}]   ;;  %s4190_s10 = inlined_call_operand.vmem [shape: f32[8,7], index: 10, kind: input, shape index: {}]   ;;  %s4191_s11 = inlined_call_operand.vmem [shape: f32[8,7], index: 11, kind: input, shape index: {}]   ;;  %s4192_s12 = inlined_call_operand.vmem [shape: f32[8,7], index: 12, kind: input, shape index: {}]   ;;  %s4193_s13 = inlined_call_operand.vmem [shape: f32[64,64], index: 13, kind: input, shape index: {}]   ;;  %s4194_s14 = inlined_call_operand.vmem [shape: f32[64,1], index: 14, kind: input, shape index: {}]   ;;  %s4195_s15 = inlined_call_operand.vmem [shape: f32[64,1], index: 15, kind: input, shape index: {}]   ;;  %s4196_s16 = inlined_call_operand.vmem [shape: f32[64,1], index: 16, kind: input, shape index: {}]   ;;  %s4197_s17 = inlined_call_operand.vmem [shape: f32[128,64], index: 17, kind: input, shape index: {}]   ;;  %s4198_s18 = inlined_call_operand.vmem [shape: f32[128,1], index: 18, kind: input, shape index: {}]   ;;  %s4199_s19 = inlined_call_operand.vmem [shape: f32[64,128], index: 19, kind: input, shape index: {}]   ;;  %s4200_s20 = inlined_call_operand.vmem [shape: f32[64,1], index: 20, kind: input, shape index: {}]   ;;  %s4201_s21 = inlined_call_operand.hbm [shape: f32[64,128], index: 21, kind: output, shape index: {}]  }
   0x1   :  { %4206 = sst [smem:[#allocation5_spill]] %s4180_s0 }
   0x2   :  { %4207 = sst [smem:[#allocation6_spill]] %s4181_s1 }
   0x3   :  { %4208 = sst [smem:[#allocation7_spill]] %s4182_s2 }
   0x4   :  { %4209 = sst [smem:[#allocation8_spill]] %s4183_s3 }
   0x5   :  { %4210 = sst [smem:[#allocation9_spill]] %s4184_s4 }
   0x6   :  { %4211 = sst [smem:[#allocation10_spill]] %s4185_s5 }
   0x7   :  { %s4212_s26 = sld [smem:[#allocation5_spill]]  ;;  %vm134_vm0 = vcmask 523264   ;;  %v3273_v5 = vmov 0   ;;  %s4213_s2 = sld [smem:[#allocation10_spill]]  ;;  %v86_v10 = vld [vmem:[%s4186_s6] sm:$0xff] }
   0x8   :  { %3137 = vset.pattern.permute.xlu0 %v3273_v5  ;;  %3138 = vset.pattern.permute.xlu1 %v3273_v5 }
   0xd   :  { %v78_v0 = vld [vmem:[%s4212_s26] sm:$0xff]  ;;  %v79_v1 = vld [vmem:[%s4212_s26 + $0x8] sm:$0xff]  ;;  %v80_v2 = vld [vmem:[%s4212_s26 + $0x10] sm:$0xff] }
   0xe   :  { %v2987_v3 = vpack.c.bf16 %v79_v1, %v78_v0  ;;  %v81_v4 = vld [vmem:[%s4212_s26 + $0x18] sm:$0xff]  ;;  %v82_v7 = vld [vmem:[%s4212_s26 + $0x20] sm:$0xff]  ;;  %v83_v8 = vld [vmem:[%s4212_s26 + $0x28] sm:$0xff] }
   0xf   :  { %v2991_v6 = vpack.c.bf16 %v81_v4, %v80_v2  ;;  %v70_v9 = vld [vmem:[%s4213_s2] sm:$0xff] }
  0x10   :  { %2988 = vmatprep.subr.bf16.mxu0 %v2987_v3  ;;  %2742 = vmatprep.mubr.msk.f32.mxu0 %vm134_vm0, %v70_v9 }
  0x11   :  { %26 = vsyncpa [#allocation3], 0  ;;  %2990 = vmatpush3.bf16.msra.mxu0 %v2987_v3  ;;  %96 = vperm.xlu0 %3137, %v86_v10   ;;  %v2995_v11 = vpack.c.bf16 %v83_v8, %v82_v7  ;;  %v84_v12 = vld [vmem:[%s4212_s26 + $0x30] sm:$0xff]  ;;  %v85_v13 = vld [vmem:[%s4212_s26 + $0x38] sm:$0xff]  ;;  %s4214_s23 = sld [smem:[#allocation6_spill]]  ;;  %v3274_v36 = vmov 0.0|0.0   ;;  %v500_v43 = vlaneseq }
  0x12   :  { %2992 = vmatprep.subr.bf16.mxu0 %v2991_v6  ;;  %v2999_v14 = vpack.c.bf16 %v85_v13, %v84_v12  ;;  %v71_v15 = vld [vmem:[%s4213_s2 + $0x8] sm:$0xff]  ;;  %v3446_v23 = vld [vmem:[%s4190_s10] sm:$0xff]  ;;  %3003 = vmatprep.subr.bf16.mxu1 %v3274_v36  ;;  %vm3275_vm1 = vmmov 0   ;;  %v3276_v38 = vmov 0.0   ;;  %s3277_s28 = smov 2   ;;  %s3278_s29 = smov 126  }
  0x13   :  { %v272_v32 = vld [vmem:[%s4187_s7] sm:$0xff]  ;;  %2760 = vmatprep.mubr.msk.f32.mxu1 %vm3275_vm1, %v3276_v38  ;;  %v87_v42 = vld [vmem:[%s4186_s6 + $0x8] sm:$0xff]  ;;  %v501_v44 = vshrl.u32 %v500_v43, 7  ;;  %s4215_s22 = sld [smem:[#allocation7_spill]]  ;;  %vm523_vm2 = vcmask 195584   ;;  %s4217_s24 = sld [smem:[#allocation9_spill]] }
  0x14   :  { %v280_v35 = vld [vmem:[%s4188_s8] sm:$0xff]  ;;  %vm2381_vm3 = vcmask 1041408   ;;  %vm2356_vm4 = vcmask 15360  }
  0x15   :  { %2994 = vmatpush3.bf16.msra.mxu0 %v2991_v6  ;;  %v502_v45 = vsub.s32 0, %v501_v44  ;;  %v507_v46 = vsub.s32 1, %v501_v44  ;;  %v514_v50 = vsub.s32 2, %v501_v44  ;;  %v517_v58 = vld [vmem:[%s4189_s9] sm:$0xff] }
  0x16   :  { %2996 = vmatprep.subr.bf16.mxu0 %v2995_v11 }
  0x17   :  { %v3440_v20 = vld [vmem:[%s4214_s23] ss:$0 sm:$0xff] }
  0x19   :  { %2998 = vmatpush3.bf16.msra.mxu0 %v2995_v11  ;;  %v497_v47 = vld [vmem:[%s4215_s22] sm:$0x7] }
  0x1a   :  { %3000 = vmatprep.subr.bf16.mxu0 %v2999_v14  ;;  %v3467_v48 = vrot.slane %v497_v47, %v502_v45  ;;  %v3469_v49 = vrot.slane %v497_v47, %v507_v46  ;;  %v3473_v54 = vrot.slane %v497_v47, %v514_v50  ;;  %v88_v47 = vld [vmem:[%s4186_s6 + $0x10] sm:$0xff]  ;;  %v3279_v50 = vmov 1  }
  0x1d   :  { %3002 = vmatpush3.bf16.msra.mxu0 %v2999_v14 }
  0x20   :  { %2743 = vmatmul.mubr.msk.f32.vlgmr.msra.gmra.mrb[0].mxu0 %vm134_vm0, %v71_v15 }
  0x90   :  { %v97_v16 = vpop.permute.xlu0 %96 }
  0xf3   :  { %v3435_v17 = vpop.f32.mrb[0].mxu0 }
  0xf4   :  { %v225_v18 = vpop.f32.mrb[1].mxu0 }
  0xf5   :  { %v226_v19 = vadd.f32 %v225_v18, %v97_v16 }
  0xf7   :  { %v264_v21 = vmax.f32 %v226_v19, 0.0 }
  0xf9   :  { %v294_v22 = vmul.f32 %v3440_v20, %v264_v21 }
  0xfb   :  { %302 = vadd.xlane.f32.xlu0 %v294_v22 }
 0x111   :  { %520 = vperm.xlu0 %3137, %v3446_v23  }
 0x188   :  { %v303_v24 = vpop.xlane.xlu0 %302 }
 0x189   :  { %v318_v25 = vmul.f32 0.03125, %v303_v24  ;;  %v281_v24 = vld [vmem:[%s4188_s8 + $0x8] sm:$0xff] }
 0x18b   :  { %v326_v26 = vsub.f32 %v264_v21, %v318_v25  ;;  %v273_v21 = vld [vmem:[%s4187_s7 + $0x8] sm:$0xff]  ;;  %v3498_v25 = vld [vmem:[%s4192_s12] sm:$0xff] }
 0x18d   :  { %v334_v27 = vmul.f32 %v3440_v20, %v326_v26 }
 0x18f   :  { %v342_v28 = vmul.f32 %v334_v27, %v334_v27  ;;  %v73_v27 = vld [vmem:[%s4213_s2 + $0x18] sm:$0xff] }
 0x190   :  { %v521_v4 = vpop.permute.xlu0 %520 }
 0x191   :  { %350 = vadd.xlane.f32.xlu1 %v342_v28 }
 0x21e   :  { %v351_v29 = vpop.xlane.xlu1 %350 }
 0x21f   :  { %v366_v30 = vmul.f32 0.03125, %v351_v29 }
 0x221   :  { %v374_v31 = vadd.f32 1e-05, %v366_v30 }
 0x223   :  { %3162 = vrsqrt.f32 %v374_v31  ;;  %v3512_v31 = vld [vmem:[%s4191_s11] sm:$0xff]  ;;  %s4216_s11 = sld [smem:[#allocation8_spill]] }
 0x22d   :  { %v3163_v33 = vpop.eup %3162 }
 0x22e   :  { %v390_v34 = vmul.f32 %v3163_v33, %v272_v32 }
 0x230   :  { %400 = vperm.xlu1 %3138, %v390_v34  }
 0x234   :  { %448 = vperm.xlu1 %3138, %v280_v35  }
 0x2af   :  { %v401_v37 = vpop.permute.xlu1 %400 }
 0x2b0   :  { %v438_v39 = vmul.f32 %v401_v37, %v326_v26  ;;  %v72_v26 = vld [vmem:[%s4213_s2 + $0x10] sm:$0xff] }
 0x2b1   :  { %2745 = vmatprep.mubr.msk.f32.mxu0 %vm134_vm0, %v72_v26 }
 0x2b2   :  { %2746 = vmatmul.mubr.msk.f32.gmra.mrb[2].mxu0 %vm134_vm0, %v73_v27 }
 0x2b3   :  { %v449_v40 = vpop.permute.xlu1 %448 }
 0x2b4   :  { %v486_v41 = vadd.f32 %v449_v40, %v438_v39 }
 0x2b6   :  { %498 = vrot.lane.b32.xlu1 %v486_v41, %s3277_s28  ;;  %v509_v53 = vmul.f32 %v3469_v49, %v486_v41 }
 0x2ba   :  { %510 = vrot.lane.b32.xlu1 %v486_v41, %s3278_s29 }
 0x2be   :  { %101 = vperm.xlu1 %3138, %v87_v42  }
 0x328   :  { %v499_v51 = vpop.permute.xlu1 %498 }
 0x329   :  { %v504_v52 = vmul.f32 %v3467_v48, %v499_v51 }
 0x32b   :  { %v3004_v55 = vpack.c.bf16 %v509_v53, %v504_v52 }
 0x32c   :  { %v511_v56 = vpop.permute.xlu1 %510 }
 0x32d   :  { %3005 = vmatpush3.bf16.msra.mxu1 %v3004_v55  ;;  %v516_v57 = vmul.f32 %v3473_v54, %v511_v56 }
 0x32e   :  { %2758 = vmatprep.subr.mxu1 %v3276_v38 }
 0x331   :  { %2759 = vmatpush3.msra.mxu1 %v516_v57 }
 0x332   :  { %2761 = vmatmul.mubr.msk.f32.vlgmr.msra.gmra.mrb[0].mxu1 %vm523_vm2, %v517_v58  ;;  %3006 = vmatprep.subr.bf16.mxu1 %v3274_v36  ;;  %v2540_v58 = vld [vmem:[%s4189_s9 + $0x8] sm:$0xff] }
 0x333   :  { %2769 = vmatprep.mubr.msk.f32.mxu1 %vm3275_vm1, %v3276_v38 }
 0x33d   :  { %v102_v59 = vpop.permute.xlu1 %101 }
 0x33e   :  { %v231_v60 = vadd.f32 %v3435_v17, %v102_v59 }
 0x340   :  { %v265_v61 = vmax.f32 %v231_v60, 0.0 }
 0x342   :  { %v295_v62 = vmul.f32 %v3440_v20, %v265_v61 }
 0x344   :  { %304 = vadd.xlane.f32.xlu1 %v295_v62 }
 0x385   :  { %v3517_v44 = vpop.f32.mrb[2].mxu0 }
 0x386   :  { %v235_v45 = vpop.f32.mrb[3].mxu0 }
 0x3d1   :  { %v305_v63 = vpop.xlane.xlu1 %304 }
 0x3d2   :  { %v319_v0 = vmul.f32 0.03125, %v305_v63 }
 0x3d4   :  { %v327_v1 = vsub.f32 %v265_v61, %v319_v0 }
 0x3d6   :  { %v335_v2 = vmul.f32 %v3440_v20, %v327_v1 }
 0x3d8   :  { %v343_v3 = vmul.f32 %v335_v2, %v335_v2 }
 0x3da   :  { %352 = vadd.xlane.f32.xlu1 %v343_v3 }
 0x405   :  { %v593_v6 = vpop.f32.mrb[0].mxu1 }
 0x406   :  { %v594_v7 = vadd.f32 %v593_v6, %v521_v4  ;;  %v2762_v8 = vpop.f32.mrb[1].mxu1 }
 0x408   :  { %v597_v9 = vmax.f32 %v594_v7, 0.0 }
 0x40a   :  { %v598_v10 = vmul.f32 %v3440_v20, %v597_v9 }
 0x40c   :  { %599 = vadd.xlane.f32.xlu0 %v598_v10 }
 0x467   :  { %v353_v11 = vpop.xlane.xlu1 %352 }
 0x468   :  { %v367_v14 = vmul.f32 0.03125, %v353_v11 }
 0x46a   :  { %v375_v17 = vadd.f32 1e-05, %v367_v14  ;;  %v274_v14 = vld [vmem:[%s4187_s7 + $0x10] sm:$0xff] }
 0x46c   :  { %3164 = vrsqrt.f32 %v375_v17  ;;  %v282_v17 = vld [vmem:[%s4188_s8 + $0x10] sm:$0xff] }
 0x476   :  { %v3165_v19 = vpop.eup %3164 }
 0x477   :  { %v391_v22 = vmul.f32 %v3165_v19, %v273_v21 }
 0x499   :  { %v600_v12 = vpop.xlane.xlu0 %599 }
 0x49a   :  { %v601_v13 = vmul.f32 0.03125, %v600_v12 }
 0x49c   :  { %v602_v15 = vsub.f32 %v597_v9, %v601_v13 }
 0x49e   :  { %v603_v16 = vmul.f32 %v3440_v20, %v602_v15 }
 0x4a0   :  { %v604_v18 = vmul.f32 %v603_v16, %v603_v16 }
 0x4a2   :  { %605 = vadd.xlane.f32.xlu1 %v604_v18 }
 0x4b3   :  { %405 = vperm.xlu1 %3138, %v391_v22  }
 0x4b7   :  { %453 = vperm.xlu1 %3138, %v281_v24  }
 0x4bb   :  { %619 = vperm.xlu1 %3138, %v3498_v25  }
 0x52f   :  { %v606_v28 = vpop.xlane.xlu1 %605 }
 0x530   :  { %v607_v29 = vmul.f32 0.03125, %v606_v28 }
 0x532   :  { %v608_v30 = vadd.f32 1e-05, %v607_v29 }
 0x533   :  { %v406_v34 = vpop.permute.xlu1 %405 }
 0x534   :  { %3166 = vrsqrt.f32 %v608_v30  ;;  %v439_v39 = vmul.f32 %v406_v34, %v327_v1 }
 0x537   :  { %v454_v35 = vpop.permute.xlu1 %453 }
 0x538   :  { %v487_v42 = vadd.f32 %v454_v35, %v439_v39 }
 0x53b   :  { %v620_v41 = vpop.permute.xlu1 %619 }
 0x53e   :  { %v3167_v32 = vpop.eup %3166 }
 0x53f   :  { %v610_v33 = vmul.f32 %v3167_v32, %v3512_v31  ;;  %v3280_v32 = vmov 2  }
 0x541   :  { %613 = vperm.xlu0 %3137, %v610_v33  }
 0x545   :  { %3139 = vset.pattern.permute.xlu0 %v3279_v50 }
 0x5c0   :  { %v614_v37 = vpop.permute.xlu0 %613 }
 0x5c1   :  { %v616_v40 = vmul.f32 %v614_v37, %v602_v15 }
 0x5c3   :  { %v3515_v43 = vadd.f32 %v620_v41, %v616_v40 }
 0x5c5   :  { %v623_v46 = vadd.f32 %v3515_v43, %v487_v42 }
 0x5c7   :  { %628 = vrot.lane.b32.xlu0 %v623_v46, %s3278_s29  ;;  %624 = vrot.lane.b32.xlu1 %v623_v46, %s3277_s28  ;;  %v627_v53 = vmul.f32 %v623_v46, %v3469_v49 }
 0x5cb   :  { %106 = vperm.xlu1 %3138, %v88_v47   ;;  %634 = vperm.xlu0 %3139, %v3446_v23   ;;  %v89_v47 = vld [vmem:[%s4186_s6 + $0x18] sm:$0xff] }
 0x639   :  { %v625_v51 = vpop.permute.xlu1 %624  ;;  %v629_v56 = vpop.permute.xlu0 %628 }
 0x63a   :  { %v626_v52 = vmul.f32 %v625_v51, %v3467_v48  ;;  %v630_v57 = vmul.f32 %v629_v56, %v3473_v54  ;;  %v2542_v56 = vld [vmem:[%s4189_s9 + $0x10] sm:$0xff] }
 0x63c   :  { %v3007_v55 = vpack.c.bf16 %v627_v53, %v626_v52 }
 0x63e   :  { %3008 = vmatpush3.bf16.msra.mxu1 %v3007_v55 }
 0x63f   :  { %2767 = vmatprep.subr.mxu1 %v3276_v38 }
 0x642   :  { %2768 = vmatpush3.msra.mxu1 %v630_v57 }
 0x643   :  { %2770 = vmatmul.mubr.msk.f32.vlgmr.msra.gmra.mrb[2].mxu1 %vm523_vm2, %v2540_v58  ;;  %3009 = vmatprep.subr.bf16.mxu1 %v3274_v36 }
 0x644   :  { %2778 = vmatprep.mubr.msk.f32.mxu1 %vm3275_vm1, %v3276_v38 }
 0x64a   :  { %v107_v59 = vpop.permute.xlu1 %106  ;;  %v635_v4 = vpop.permute.xlu0 %634 }
 0x64b   :  { %v236_v60 = vadd.f32 %v235_v45, %v107_v59 }
 0x64d   :  { %v266_v61 = vmax.f32 %v236_v60, 0.0 }
 0x64f   :  { %v296_v62 = vmul.f32 %v3440_v20, %v266_v61 }
 0x651   :  { %306 = vadd.xlane.f32.xlu1 %v296_v62 }
 0x6de   :  { %v307_v63 = vpop.xlane.xlu1 %306 }
 0x6df   :  { %v320_v0 = vmul.f32 0.03125, %v307_v63 }
 0x6e1   :  { %v328_v1 = vsub.f32 %v266_v61, %v320_v0 }
 0x6e3   :  { %v336_v2 = vmul.f32 %v3440_v20, %v328_v1 }
 0x6e5   :  { %v344_v3 = vmul.f32 %v336_v2, %v336_v2 }
 0x6e7   :  { %354 = vadd.xlane.f32.xlu1 %v344_v3 }
 0x716   :  { %v706_v6 = vpop.f32.mrb[2].mxu1 }
 0x717   :  { %v707_v7 = vadd.f32 %v706_v6, %v635_v4  ;;  %v2771_v8 = vpop.f32.mrb[3].mxu1 }
 0x719   :  { %v710_v9 = vmax.f32 %v707_v7, 0.0 }
 0x71b   :  { %v711_v10 = vmul.f32 %v3440_v20, %v710_v9 }
 0x71d   :  { %712 = vadd.xlane.f32.xlu0 %v711_v10 }
 0x774   :  { %v355_v11 = vpop.xlane.xlu1 %354 }
 0x775   :  { %v368_v12 = vmul.f32 0.03125, %v355_v11 }
 0x777   :  { %v376_v13 = vadd.f32 1e-05, %v368_v12 }
 0x779   :  { %3168 = vrsqrt.f32 %v376_v13 }
 0x783   :  { %v3169_v15 = vpop.eup %3168 }
 0x784   :  { %v392_v16 = vmul.f32 %v3169_v15, %v274_v14 }
 0x786   :  { %410 = vperm.xlu1 %3138, %v392_v16   ;;  %v275_v16 = vld [vmem:[%s4187_s7 + $0x18] sm:$0xff] }
 0x78a   :  { %458 = vperm.xlu1 %3138, %v282_v17  }
 0x78e   :  { %3140 = vset.pattern.permute.xlu1 %v3279_v50 }
 0x78f   :  { %731 = vperm.xlu1 %3140, %v3498_v25  }
 0x793   :  { %3142 = vset.pattern.permute.xlu1 %v3280_v32 }
 0x7aa   :  { %v713_v18 = vpop.xlane.xlu0 %712 }
 0x7ab   :  { %v714_v19 = vmul.f32 0.03125, %v713_v18 }
 0x7ad   :  { %v715_v21 = vsub.f32 %v710_v9, %v714_v19  ;;  %v74_v19 = vld [vmem:[%s4213_s2 + $0x20] sm:$0xff] }
 0x7ae   :  { %2748 = vmatprep.mubr.msk.f32.mxu0 %vm134_vm0, %v74_v19  ;;  %v91_v19 = vld [vmem:[%s4186_s6 + $0x28] sm:$0xff] }
 0x7af   :  { %v716_v22 = vmul.f32 %v3440_v20, %v715_v21 }
 0x7b1   :  { %v717_v24 = vmul.f32 %v716_v22, %v716_v22 }
 0x7b3   :  { %718 = vadd.xlane.f32.xlu0 %v717_v24 }
 0x805   :  { %v411_v33 = vpop.permute.xlu1 %410 }
 0x806   :  { %v440_v39 = vmul.f32 %v411_v33, %v328_v1 }
 0x809   :  { %v459_v34 = vpop.permute.xlu1 %458 }
 0x80a   :  { %v488_v41 = vadd.f32 %v459_v34, %v440_v39 }
 0x80e   :  { %v732_v37 = vpop.permute.xlu1 %731 }
 0x840   :  { %v719_v26 = vpop.xlane.xlu0 %718 }
 0x841   :  { %v720_v27 = vmul.f32 0.03125, %v719_v26 }
 0x843   :  { %v721_v28 = vadd.f32 1e-05, %v720_v27 }
 0x845   :  { %3170 = vrsqrt.f32 %v721_v28 }
 0x84f   :  { %v3171_v29 = vpop.eup %3170 }
 0x850   :  { %v723_v30 = vmul.f32 %v3171_v29, %v3512_v31  ;;  %v283_v29 = vld [vmem:[%s4188_s8 + $0x18] sm:$0xff] }
 0x852   :  { %726 = vperm.xlu0 %3139, %v723_v30   ;;  %v90_v30 = vld [vmem:[%s4186_s6 + $0x20] sm:$0xff] }
 0x856   :  { %3141 = vset.pattern.permute.xlu0 %v3273_v5 }
 0x8d1   :  { %v727_v35 = vpop.permute.xlu0 %726 }
 0x8d2   :  { %v729_v40 = vmul.f32 %v727_v35, %v715_v21  ;;  %v75_v21 = vld [vmem:[%s4213_s2 + $0x28] sm:$0xff] }
 0x8d3   :  { %2749 = vmatmul.mubr.msk.f32.gmra.mrb[4].mxu0 %vm134_vm0, %v75_v21 }
 0x8d4   :  { %v734_v42 = vadd.f32 %v732_v37, %v729_v40 }
 0x8d6   :  { %v735_v45 = vadd.f32 %v734_v42, %v488_v41  ;;  %v3024_v46 = vpack.c.bf16 %v734_v42, %v3515_v43 }
 0x8d8   :  { %3025 = vmatprep.subr.bf16.mxu0 %v3024_v46  ;;  %740 = vrot.lane.b32.xlu1 %v735_v45, %s3278_s29  ;;  %v739_v52 = vmul.f32 %v735_v45, %v3469_v49 }
 0x8d9   :  { %736 = vrot.lane.b32.xlu0 %v735_v45, %s3277_s28  ;;  %3027 = vmatpush3.bf16.msra.mxu0 %v3024_v46  ;;  %v3281_v45 = vmov 3  }
 0x8dc   :  { %746 = vperm.xlu1 %3142, %v3446_v23  }
 0x8dd   :  { %111 = vperm.xlu0 %3141, %v89_v47  }
 0x94a   :  { %v741_v43 = vpop.permute.xlu1 %740 }
 0x94b   :  { %v737_v50 = vpop.permute.xlu0 %736  ;;  %v742_v55 = vmul.f32 %v741_v43, %v3473_v54 }
 0x94c   :  { %v738_v51 = vmul.f32 %v737_v50, %v3467_v48 }
 0x94e   :  { %v3010_v53 = vpack.c.bf16 %v739_v52, %v738_v51 }
 0x950   :  { %3011 = vmatpush3.bf16.msra.mxu1 %v3010_v53 }
 0x951   :  { %2776 = vmatprep.subr.mxu1 %v3276_v38 }
 0x954   :  { %2777 = vmatpush3.msra.mxu1 %v742_v55 }
 0x955   :  { %2779 = vmatmul.mubr.msk.f32.vlgmr.msra.gmra.mrb[4].mxu1 %vm523_vm2, %v2542_v56  ;;  %3012 = vmatprep.subr.bf16.mxu1 %v3274_v36 }
 0x956   :  { %2787 = vmatprep.mubr.msk.f32.mxu1 %vm3275_vm1, %v3276_v38 }
 0x95b   :  { %v747_v61 = vpop.permute.xlu1 %746 }
 0x95c   :  { %v112_v57 = vpop.permute.xlu0 %111 }
 0x95d   :  { %v241_v58 = vadd.f32 %v3517_v44, %v112_v57 }
 0x95f   :  { %v267_v59 = vmax.f32 %v241_v58, 0.0 }
 0x961   :  { %v297_v60 = vmul.f32 %v3440_v20, %v267_v59 }
 0x963   :  { %308 = vadd.xlane.f32.xlu1 %v297_v60  ;;  %v2544_v60 = vld [vmem:[%s4189_s9 + $0x18] sm:$0xff] }
 0x9a6   :  { %v3598_v42 = vpop.f32.mrb[4].mxu0 }
 0x9a7   :  { %v245_v46 = vpop.f32.mrb[5].mxu0 }
 0x9f0   :  { %v309_v62 = vpop.xlane.xlu1 %308 }
 0x9f1   :  { %v321_v63 = vmul.f32 0.03125, %v309_v62 }
 0x9f3   :  { %v329_v1 = vsub.f32 %v267_v59, %v321_v63 }
 0x9f5   :  { %v337_v7 = vmul.f32 %v3440_v20, %v329_v1 }
 0x9f7   :  { %v345_v8 = vmul.f32 %v337_v7, %v337_v7 }
 0xa28   :  { %v818_v0 = vpop.f32.mrb[4].mxu1 }
 0xa29   :  { %v819_v2 = vadd.f32 %v818_v0, %v747_v61  ;;  %v2780_v3 = vpop.f32.mrb[5].mxu1 }
 0xa2b   :  { %v822_v4 = vmax.f32 %v819_v2, 0.0 }
 0xa2d   :  { %v823_v6 = vmul.f32 %v3440_v20, %v822_v4 }
 0xa2f   :  { %824 = vadd.xlane.f32.xlu0 %v823_v6 }
 0xa33   :  { %356 = vadd.xlane.f32.xlu0 %v345_v8 }
 0xabc   :  { %v825_v44 = vpop.xlane.xlu0 %824 }
 0xabd   :  { %v826_v9 = vmul.f32 0.03125, %v825_v44 }
 0xabf   :  { %v827_v10 = vsub.f32 %v822_v4, %v826_v9 }
 0xac0   :  { %v357_v11 = vpop.xlane.xlu0 %356 }
 0xac1   :  { %v369_v12 = vmul.f32 0.03125, %v357_v11  ;;  %v828_v13 = vmul.f32 %v3440_v20, %v827_v10 }
 0xac3   :  { %v377_v14 = vadd.f32 1e-05, %v369_v12  ;;  %v829_v15 = vmul.f32 %v828_v13, %v828_v13 }
 0xac5   :  { %3172 = vrsqrt.f32 %v377_v14  ;;  %830 = vadd.xlane.f32.xlu1 %v829_v15 }
 0xacf   :  { %v3173_v17 = vpop.eup %3172 }
 0xad0   :  { %v393_v18 = vmul.f32 %v3173_v17, %v275_v16  ;;  %v276_v16 = vld [vmem:[%s4187_s7 + $0x20] sm:$0xff] }
 0xad2   :  { %415 = vperm.xlu0 %3141, %v393_v18  }
 0xad6   :  { %3144 = vset.pattern.permute.xlu0 %v3280_v32 }
 0xad7   :  { %843 = vperm.xlu0 %3144, %v3498_v25  }
 0xadb   :  { %3145 = vset.pattern.permute.xlu0 %v3273_v5 }
 0xadc   :  { %116 = vperm.xlu0 %3145, %v90_v30  }
 0xb51   :  { %v416_v32 = vpop.permute.xlu0 %415 }
 0xb52   :  { %v831_v22 = vpop.xlane.xlu1 %830  ;;  %v441_v37 = vmul.f32 %v416_v32, %v329_v1 }
 0xb53   :  { %v832_v24 = vmul.f32 0.03125, %v831_v22 }
 0xb55   :  { %v833_v26 = vadd.f32 1e-05, %v832_v24 }
 0xb56   :  { %v844_v35 = vpop.permute.xlu0 %843 }
 0xb57   :  { %3174 = vrsqrt.f32 %v833_v26 }
 0xb5b   :  { %v117_v50 = vpop.permute.xlu0 %116 }
 0xb5c   :  { %v246_v51 = vadd.f32 %v245_v46, %v117_v50 }
 0xb5e   :  { %v268_v52 = vmax.f32 %v246_v51, 0.0 }
 0xb60   :  { %v298_v53 = vmul.f32 %v3440_v20, %v268_v52 }
 0xb61   :  { %v3175_v27 = vpop.eup %3174 }
 0xb62   :  { %v835_v28 = vmul.f32 %v3175_v27, %v3512_v31 }
 0xb64   :  { %838 = vperm.xlu1 %3142, %v835_v28   ;;  %v284_v28 = vld [vmem:[%s4188_s8 + $0x20] sm:$0xff] }
 0xb68   :  { %3143 = vset.pattern.permute.xlu1 %v3273_v5 }
 0xb69   :  { %463 = vperm.xlu1 %3143, %v283_v29   ;;  %v3282_v29 = vmov 4  }
 0xb6d   :  { %3146 = vset.pattern.permute.xlu1 %v3281_v45 }
 0xbe3   :  { %v839_v33 = vpop.permute.xlu1 %838 }
 0xbe4   :  { %v841_v34 = vmul.f32 %v839_v33, %v827_v10 }
 0xbe6   :  { %v3596_v40 = vadd.f32 %v844_v35, %v841_v34 }
 0xbe8   :  { %v464_v39 = vpop.permute.xlu1 %463 }
 0xbe9   :  { %v489_v41 = vadd.f32 %v464_v39, %v441_v37 }
 0xbeb   :  { %v847_v47 = vadd.f32 %v3596_v40, %v489_v41 }
 0xbed   :  { %848 = vrot.lane.b32.xlu1 %v847_v47, %s3277_s28  ;;  %v851_v56 = vmul.f32 %v847_v47, %v3469_v49 }
 0xbf1   :  { %852 = vrot.lane.b32.xlu1 %v847_v47, %s3278_s29 }
 0xbf5   :  { %858 = vperm.xlu1 %3146, %v3446_v23  }
 0xc19   :  { %310 = vadd.xlane.f32.xlu1 %v298_v53 }
 0xc5f   :  { %v849_v43 = vpop.permute.xlu1 %848 }
 0xc60   :  { %v850_v55 = vmul.f32 %v849_v43, %v3467_v48 }
 0xc62   :  { %v3013_v57 = vpack.c.bf16 %v851_v56, %v850_v55 }
 0xc63   :  { %v853_v58 = vpop.permute.xlu1 %852 }
 0xc64   :  { %3014 = vmatpush3.bf16.msra.mxu1 %v3013_v57  ;;  %v854_v59 = vmul.f32 %v853_v58, %v3473_v54 }
 0xc65   :  { %2785 = vmatprep.subr.mxu1 %v3276_v38 }
 0xc68   :  { %2786 = vmatpush3.msra.mxu1 %v854_v59 }
 0xc69   :  { %2788 = vmatmul.mubr.msk.f32.vlgmr.msra.gmra.mrb[6].mxu1 %vm523_vm2, %v2544_v60  ;;  %3015 = vmatprep.subr.bf16.mxu1 %v3274_v36 }
 0xc6a   :  { %2796 = vmatprep.mubr.msk.f32.mxu1 %vm3275_vm1, %v3276_v38 }
 0xc74   :  { %v859_v61 = vpop.permute.xlu1 %858 }
 0xca6   :  { %v311_v62 = vpop.xlane.xlu1 %310 }
 0xca7   :  { %v322_v63 = vmul.f32 0.03125, %v311_v62 }
 0xca9   :  { %v330_v0 = vsub.f32 %v268_v52, %v322_v63 }
 0xcab   :  { %v338_v6 = vmul.f32 %v3440_v20, %v330_v0 }
 0xcad   :  { %v346_v8 = vmul.f32 %v338_v6, %v338_v6 }
 0xd3c   :  { %v930_v1 = vpop.f32.mrb[6].mxu1 }
 0xd3d   :  { %v931_v2 = vadd.f32 %v930_v1, %v859_v61  ;;  %v2789_v3 = vpop.f32.mrb[7].mxu1 }
 0xd3f   :  { %v934_v4 = vmax.f32 %v931_v2, 0.0 }
 0xd41   :  { %v935_v7 = vmul.f32 %v3440_v20, %v934_v4 }
 0xd43   :  { %936 = vadd.xlane.f32.xlu0 %v935_v7 }
 0xd47   :  { %358 = vadd.xlane.f32.xlu0 %v346_v8 }
 0xdd0   :  { %v937_v44 = vpop.xlane.xlu0 %936 }
 0xdd1   :  { %v938_v9 = vmul.f32 0.03125, %v937_v44 }
 0xdd3   :  { %v939_v10 = vsub.f32 %v934_v4, %v938_v9 }
 0xdd4   :  { %v359_v11 = vpop.xlane.xlu0 %358 }
 0xdd5   :  { %v370_v12 = vmul.f32 0.03125, %v359_v11  ;;  %v940_v13 = vmul.f32 %v3440_v20, %v939_v10 }
 0xdd7   :  { %v378_v14 = vadd.f32 1e-05, %v370_v12  ;;  %v941_v15 = vmul.f32 %v940_v13, %v940_v13  ;;  %v277_v13 = vld [vmem:[%s4187_s7 + $0x28] sm:$0xff] }
 0xdd9   :  { %3176 = vrsqrt.f32 %v378_v14  ;;  %942 = vadd.xlane.f32.xlu1 %v941_v15 }
 0xde3   :  { %v3177_v17 = vpop.eup %3176 }
 0xde4   :  { %v394_v18 = vmul.f32 %v3177_v17, %v276_v16  ;;  %v76_v16 = vld [vmem:[%s4213_s2 + $0x30] sm:$0xff]  ;;  %v77_v17 = vld [vmem:[%s4213_s2 + $0x38] sm:$0xff] }
 0xde5   :  { %2751 = vmatprep.mubr.msk.f32.mxu0 %vm134_vm0, %v76_v16 }
 0xde6   :  { %420 = vperm.xlu0 %3145, %v394_v18   ;;  %2752 = vmatmul.mubr.msk.f32.gmra.mrb[6].mxu0 %vm134_vm0, %v77_v17 }
 0xdea   :  { %3148 = vset.pattern.permute.xlu0 %v3281_v45 }
 0xdeb   :  { %955 = vperm.xlu0 %3148, %v3498_v25  }
 0xdef   :  { %3149 = vset.pattern.permute.xlu0 %v3273_v5 }
 0xdf0   :  { %121 = vperm.xlu0 %3149, %v91_v19  }
 0xe65   :  { %v421_v30 = vpop.permute.xlu0 %420 }
 0xe66   :  { %v943_v21 = vpop.xlane.xlu1 %942  ;;  %v442_v37 = vmul.f32 %v421_v30, %v330_v0 }
 0xe67   :  { %v944_v22 = vmul.f32 0.03125, %v943_v21 }
 0xe69   :  { %v945_v24 = vadd.f32 1e-05, %v944_v22 }
 0xe6a   :  { %v956_v34 = vpop.permute.xlu0 %955 }
 0xe6b   :  { %3178 = vrsqrt.f32 %v945_v24 }
 0xe6f   :  { %v122_v47 = vpop.permute.xlu0 %121 }
 0xe70   :  { %v251_v50 = vadd.f32 %v3598_v42, %v122_v47  ;;  %v2546_v42 = vld [vmem:[%s4189_s9 + $0x20] sm:$0xff] }
 0xe72   :  { %v269_v51 = vmax.f32 %v251_v50, 0.0 }
 0xe74   :  { %v299_v52 = vmul.f32 %v3440_v20, %v269_v51 }
 0xe75   :  { %v3179_v26 = vpop.eup %3178 }
 0xe76   :  { %v947_v27 = vmul.f32 %v3179_v26, %v3512_v31  ;;  %v285_v26 = vld [vmem:[%s4188_s8 + $0x28] sm:$0xff] }
 0xe78   :  { %950 = vperm.xlu1 %3146, %v947_v27   ;;  %v92_v27 = vld [vmem:[%s4186_s6 + $0x30] sm:$0xff] }
 0xe7c   :  { %3147 = vset.pattern.permute.xlu1 %v3273_v5 }
 0xe7d   :  { %468 = vperm.xlu1 %3147, %v284_v28  }
 0xe81   :  { %3150 = vset.pattern.permute.xlu1 %v3282_v29 }
 0xef7   :  { %v951_v32 = vpop.permute.xlu1 %950 }
 0xef8   :  { %v953_v33 = vmul.f32 %v951_v32, %v939_v10 }
 0xefa   :  { %v958_v35 = vadd.f32 %v956_v34, %v953_v33 }
 0xefc   :  { %v469_v39 = vpop.permute.xlu1 %468  ;;  %v3028_v41 = vpack.c.bf16 %v958_v35, %v3596_v40 }
 0xefd   :  { %v490_v45 = vadd.f32 %v469_v39, %v442_v37  ;;  %v3675_v39 = vpop.f32.mrb[6].mxu0 }
 0xefe   :  { %3029 = vmatprep.subr.bf16.mxu0 %v3028_v41 }
 0xeff   :  { %v959_v46 = vadd.f32 %v958_v35, %v490_v45  ;;  %3031 = vmatpush3.bf16.msra.mxu0 %v3028_v41  ;;  %v3283_v41 = vmov 5   ;;  %v255_v45 = vpop.f32.mrb[7].mxu0 }
 0xf01   :  { %960 = vrot.lane.b32.xlu1 %v959_v46, %s3277_s28  ;;  %v963_v43 = vmul.f32 %v959_v46, %v3469_v49 }
 0xf05   :  { %964 = vrot.lane.b32.xlu1 %v959_v46, %s3278_s29 }
 0xf09   :  { %970 = vperm.xlu1 %3150, %v3446_v23  }
 0xf2d   :  { %312 = vadd.xlane.f32.xlu1 %v299_v52 }
 0xf73   :  { %v961_v53 = vpop.permute.xlu1 %960 }
 0xf74   :  { %v962_v40 = vmul.f32 %v961_v53, %v3467_v48 }
 0xf76   :  { %v3016_v55 = vpack.c.bf16 %v963_v43, %v962_v40 }
 0xf77   :  { %v965_v56 = vpop.permute.xlu1 %964 }
 0xf78   :  { %3017 = vmatpush3.bf16.msra.mxu1 %v3016_v55  ;;  %v966_v57 = vmul.f32 %v965_v56, %v3473_v54 }
 0xf79   :  { %2794 = vmatprep.subr.mxu1 %v3276_v38 }
 0xf7c   :  { %2795 = vmatpush3.msra.mxu1 %v966_v57 }
 0xf7d   :  { %2797 = vmatmul.mubr.msk.f32.vlgmr.msra.gmra.mrb[8].mxu1 %vm523_vm2, %v2546_v42  ;;  %3018 = vmatprep.subr.bf16.mxu1 %v3274_v36  ;;  %v2548_v42 = vld [vmem:[%s4189_s9 + $0x28] sm:$0xff] }
 0xf7e   :  { %2805 = vmatprep.mubr.msk.f32.mxu1 %vm3275_vm1, %v3276_v38 }
 0xf88   :  { %v971_v58 = vpop.permute.xlu1 %970 }
 0xfba   :  { %v313_v59 = vpop.xlane.xlu1 %312 }
 0xfbb   :  { %v323_v60 = vmul.f32 0.03125, %v313_v59 }
 0xfbd   :  { %v331_v62 = vsub.f32 %v269_v51, %v323_v60 }
 0xfbf   :  { %v339_v3 = vmul.f32 %v3440_v20, %v331_v62 }
 0xfc1   :  { %v347_v4 = vmul.f32 %v339_v3, %v339_v3 }
0x1050   :  { %v1042_v61 = vpop.f32.mrb[8].mxu1 }
0x1051   :  { %v1043_v63 = vadd.f32 %v1042_v61, %v971_v58  ;;  %v2798_v0 = vpop.f32.mrb[9].mxu1 }
0x1053   :  { %v1046_v1 = vmax.f32 %v1043_v63, 0.0 }
0x1055   :  { %v1047_v2 = vmul.f32 %v3440_v20, %v1046_v1 }
0x1057   :  { %1048 = vadd.xlane.f32.xlu0 %v1047_v2 }
0x105b   :  { %360 = vadd.xlane.f32.xlu0 %v347_v4 }
0x10e4   :  { %v1049_v6 = vpop.xlane.xlu0 %1048 }
0x10e5   :  { %v1050_v7 = vmul.f32 0.03125, %v1049_v6 }
0x10e7   :  { %v1051_v8 = vsub.f32 %v1046_v1, %v1050_v7 }
0x10e8   :  { %v361_v44 = vpop.xlane.xlu0 %360 }
0x10e9   :  { %v371_v9 = vmul.f32 0.03125, %v361_v44  ;;  %v1052_v10 = vmul.f32 %v3440_v20, %v1051_v8 }
0x10eb   :  { %v379_v11 = vadd.f32 1e-05, %v371_v9  ;;  %v1053_v12 = vmul.f32 %v1052_v10, %v1052_v10 }
0x10ed   :  { %3180 = vrsqrt.f32 %v379_v11  ;;  %1054 = vadd.xlane.f32.xlu1 %v1053_v12  ;;  %v278_v12 = vld [vmem:[%s4187_s7 + $0x30] sm:$0xff] }
0x10f7   :  { %v3181_v14 = vpop.eup %3180 }
0x10f8   :  { %v395_v15 = vmul.f32 %v3181_v14, %v277_v13 }
0x10fa   :  { %425 = vperm.xlu0 %3149, %v395_v15   ;;  %v93_v15 = vld [vmem:[%s4186_s6 + $0x38] sm:$0xff] }
0x10fe   :  { %3152 = vset.pattern.permute.xlu0 %v3282_v29 }
0x10ff   :  { %1067 = vperm.xlu0 %3152, %v3498_v25  }
0x1103   :  { %3153 = vset.pattern.permute.xlu0 %v3273_v5 }
0x1104   :  { %126 = vperm.xlu0 %3153, %v92_v27  }
0x1179   :  { %v426_v28 = vpop.permute.xlu0 %425 }
0x117a   :  { %v1055_v18 = vpop.xlane.xlu1 %1054  ;;  %v443_v33 = vmul.f32 %v426_v28, %v331_v62 }
0x117b   :  { %v1056_v19 = vmul.f32 0.03125, %v1055_v18 }
0x117d   :  { %v1057_v21 = vadd.f32 1e-05, %v1056_v19 }
0x117e   :  { %v1068_v32 = vpop.permute.xlu0 %1067 }
0x117f   :  { %3182 = vrsqrt.f32 %v1057_v21  ;;  %v286_v21 = vld [vmem:[%s4188_s8 + $0x30] sm:$0xff] }
0x1183   :  { %v127_v47 = vpop.permute.xlu0 %126 }
0x1184   :  { %v256_v50 = vadd.f32 %v255_v45, %v127_v47  ;;  %v3717_v47 = vld [vmem:[%s4214_s23] ss:$0 sm:$0xff] }
0x1186   :  { %v270_v51 = vmax.f32 %v256_v50, 0.0 }
0x1188   :  { %v300_v52 = vmul.f32 %v3440_v20, %v270_v51 }
0x1189   :  { %v3183_v22 = vpop.eup %3182 }
0x118a   :  { %v1059_v24 = vmul.f32 %v3183_v22, %v3512_v31  ;;  %v3284_v22 = vmov 6  }
0x118c   :  { %1062 = vperm.xlu1 %3150, %v1059_v24  }
0x1190   :  { %3151 = vset.pattern.permute.xlu1 %v3273_v5 }
0x1191   :  { %473 = vperm.xlu1 %3151, %v285_v26  }
0x1195   :  { %3154 = vset.pattern.permute.xlu1 %v3283_v41 }
0x120b   :  { %v1063_v29 = vpop.permute.xlu1 %1062 }
0x120c   :  { %v1065_v30 = vmul.f32 %v1063_v29, %v1051_v8 }
0x120e   :  { %v3673_v35 = vadd.f32 %v1068_v32, %v1065_v30 }
0x1210   :  { %v474_v34 = vpop.permute.xlu1 %473 }
0x1211   :  { %v491_v37 = vadd.f32 %v474_v34, %v443_v33 }
0x1213   :  { %v1071_v46 = vadd.f32 %v3673_v35, %v491_v37 }
0x1215   :  { %1072 = vrot.lane.b32.xlu1 %v1071_v46, %s3277_s28  ;;  %v1075_v43 = vmul.f32 %v1071_v46, %v3469_v49 }
0x1219   :  { %1076 = vrot.lane.b32.xlu1 %v1071_v46, %s3278_s29 }
0x121d   :  { %1082 = vperm.xlu1 %3154, %v3446_v23  }
0x1241   :  { %314 = vadd.xlane.f32.xlu1 %v300_v52 }
0x1287   :  { %v1073_v53 = vpop.permute.xlu1 %1072 }
0x1288   :  { %v1074_v40 = vmul.f32 %v1073_v53, %v3467_v48 }
0x128a   :  { %v3019_v55 = vpack.c.bf16 %v1075_v43, %v1074_v40 }
0x128b   :  { %v1077_v56 = vpop.permute.xlu1 %1076 }
0x128c   :  { %3020 = vmatpush3.bf16.msra.mxu1 %v3019_v55  ;;  %v1078_v57 = vmul.f32 %v1077_v56, %v3473_v54 }
0x128d   :  { %2803 = vmatprep.subr.mxu1 %v3276_v38 }
0x1290   :  { %2804 = vmatpush3.msra.mxu1 %v1078_v57 }
0x1291   :  { %2806 = vmatmul.mubr.msk.f32.vlgmr.msra.gmra.mrb[10].mxu1 %vm523_vm2, %v2548_v42  ;;  %3021 = vmatprep.subr.bf16.mxu1 %v3274_v36 }
0x1292   :  { %2814 = vmatprep.mubr.msk.f32.mxu1 %vm3275_vm1, %v3276_v38 }
0x129c   :  { %v1083_v58 = vpop.permute.xlu1 %1082 }
0x12ce   :  { %v315_v59 = vpop.xlane.xlu1 %314 }
0x12cf   :  { %v324_v60 = vmul.f32 0.03125, %v315_v59 }
0x12d1   :  { %v332_v61 = vsub.f32 %v270_v51, %v324_v60 }
0x12d3   :  { %v340_v2 = vmul.f32 %v3440_v20, %v332_v61 }
0x12d5   :  { %v348_v4 = vmul.f32 %v340_v2, %v340_v2 }
0x1364   :  { %v1154_v62 = vpop.f32.mrb[10].mxu1 }
0x1365   :  { %v1155_v63 = vadd.f32 %v1154_v62, %v1083_v58  ;;  %v2807_v0 = vpop.f32.mrb[11].mxu1 }
0x1367   :  { %v1158_v1 = vmax.f32 %v1155_v63, 0.0 }
0x1369   :  { %v1159_v3 = vmul.f32 %v3440_v20, %v1158_v1 }
0x136b   :  { %1160 = vadd.xlane.f32.xlu0 %v1159_v3 }
0x136f   :  { %362 = vadd.xlane.f32.xlu0 %v348_v4  ;;  %v279_v4 = vld [vmem:[%s4187_s7 + $0x38] sm:$0xff] }
0x13f8   :  { %v1161_v6 = vpop.xlane.xlu0 %1160 }
0x13f9   :  { %v1162_v36 = vmul.f32 0.03125, %v1161_v6 }
0x13fb   :  { %v1163_v7 = vsub.f32 %v1158_v1, %v1162_v36 }
0x13fc   :  { %v363_v8 = vpop.xlane.xlu0 %362 }
0x13fd   :  { %v372_v44 = vmul.f32 0.03125, %v363_v8  ;;  %v1164_v9 = vmul.f32 %v3440_v20, %v1163_v7 }
0x13ff   :  { %v380_v10 = vadd.f32 1e-05, %v372_v44  ;;  %v1165_v11 = vmul.f32 %v1164_v9, %v1164_v9 }
0x1401   :  { %3184 = vrsqrt.f32 %v380_v10  ;;  %1166 = vadd.xlane.f32.xlu1 %v1165_v11  ;;  %v287_v11 = vld [vmem:[%s4188_s8 + $0x38] sm:$0xff] }
0x140b   :  { %v3185_v13 = vpop.eup %3184 }
0x140c   :  { %v396_v14 = vmul.f32 %v3185_v13, %v278_v12  ;;  %v1304_v12 = vld [vmem:[%s4194_s14 + $0x8] sm:$0xff]  ;;  %v1307_v13 = vld [vmem:[%s4194_s14 + $0x20] sm:$0xff] }
0x140e   :  { %430 = vperm.xlu0 %3153, %v396_v14   ;;  %v1309_v14 = vld [vmem:[%s4194_s14 + $0x30] sm:$0xff] }
0x1412   :  { %3156 = vset.pattern.permute.xlu0 %v3283_v41 }
0x1413   :  { %1179 = vperm.xlu0 %3156, %v3498_v25  }
0x1417   :  { %3157 = vset.pattern.permute.xlu0 %v3273_v5 }
0x1418   :  { %131 = vperm.xlu0 %3157, %v93_v15   ;;  %v1305_v15 = vld [vmem:[%s4194_s14 + $0x10] sm:$0xff] }
0x148d   :  { %v431_v24 = vpop.permute.xlu0 %430 }
0x148e   :  { %v1167_v20 = vpop.xlane.xlu1 %1166  ;;  %v444_v30 = vmul.f32 %v431_v24, %v332_v61 }
0x148f   :  { %v1168_v16 = vmul.f32 0.03125, %v1167_v20  ;;  %v1308_v20 = vld [vmem:[%s4194_s14 + $0x28] sm:$0xff] }
0x1491   :  { %v1169_v17 = vadd.f32 1e-05, %v1168_v16  ;;  %v1310_v16 = vld [vmem:[%s4194_s14 + $0x38] sm:$0xff] }
0x1492   :  { %v1180_v28 = vpop.permute.xlu0 %1179 }
0x1493   :  { %3186 = vrsqrt.f32 %v1169_v17 }
0x1497   :  { %v132_v41 = vpop.permute.xlu0 %131 }
0x1498   :  { %v261_v45 = vadd.f32 %v3675_v39, %v132_v41  ;;  %v2550_v39 = vld [vmem:[%s4189_s9 + $0x30] sm:$0xff]  ;;  %v1302_v41 = vld [vmem:[%s4193_s13 + $0x38] sm:$0xff] }
0x149a   :  { %v271_v46 = vmax.f32 %v261_v45, 0.0 }
0x149d   :  { %v3187_v18 = vpop.eup %3186 }
0x149e   :  { %v1171_v19 = vmul.f32 %v3187_v18, %v3512_v31 }
0x14a0   :  { %1174 = vperm.xlu1 %3154, %v1171_v19  }
0x14a4   :  { %3155 = vset.pattern.permute.xlu1 %v3273_v5 }
0x14a5   :  { %478 = vperm.xlu1 %3155, %v286_v21  }
0x14a9   :  { %3158 = vset.pattern.permute.xlu1 %v3284_v22 }
0x151f   :  { %v1175_v26 = vpop.permute.xlu1 %1174 }
0x1520   :  { %v1177_v27 = vmul.f32 %v1175_v26, %v1163_v7 }
0x1522   :  { %v1182_v29 = vadd.f32 %v1180_v28, %v1177_v27 }
0x1524   :  { %v479_v32 = vpop.permute.xlu1 %478  ;;  %v3032_v33 = vpack.c.bf16 %v1182_v29, %v3673_v35  ;;  %v301_v35 = vmul.f32 %v3717_v47, %v271_v46 }
0x1525   :  { %v492_v34 = vadd.f32 %v479_v32, %v444_v30  ;;  %v1297_v30 = vld [vmem:[%s4193_s13 + $0x10] sm:$0xff]  ;;  %v1298_v32 = vld [vmem:[%s4193_s13 + $0x18] sm:$0xff] }
0x1526   :  { %3033 = vmatprep.subr.bf16.mxu0 %v3032_v33 }
0x1527   :  { %v1183_v37 = vadd.f32 %v1182_v29, %v492_v34  ;;  %3035 = vmatpush3.bf16.msra.mxu0 %v3032_v33  ;;  %v1296_v29 = vld [vmem:[%s4193_s13 + $0x8] sm:$0xff]  ;;  %v1299_v33 = vld [vmem:[%s4193_s13 + $0x20] sm:$0xff] }
0x1528   :  { %v1300_v34 = vld [vmem:[%s4193_s13 + $0x28] sm:$0xff] }
0x1529   :  { %1184 = vrot.lane.b32.xlu1 %v1183_v37, %s3277_s28  ;;  %v1187_v52 = vmul.f32 %v1183_v37, %v3469_v49 }
0x152d   :  { %1188 = vrot.lane.b32.xlu1 %v1183_v37, %s3278_s29  ;;  %v1301_v37 = vld [vmem:[%s4193_s13 + $0x30] sm:$0xff] }
0x1531   :  { %1194 = vperm.xlu1 %3158, %v3446_v23  }
0x1555   :  { %316 = vadd.xlane.f32.xlu1 %v301_v35 }
0x159b   :  { %v1185_v50 = vpop.permute.xlu1 %1184 }
0x159c   :  { %v1186_v51 = vmul.f32 %v1185_v50, %v3467_v48 }
0x159e   :  { %v3022_v53 = vpack.c.bf16 %v1187_v52, %v1186_v51 }
0x159f   :  { %v1189_v40 = vpop.permute.xlu1 %1188 }
0x15a0   :  { %3023 = vmatpush3.bf16.msra.mxu1 %v3022_v53  ;;  %v1190_v23 = vmul.f32 %v1189_v40, %v3473_v54 }
0x15a1   :  { %2812 = vmatprep.subr.mxu1 %v3276_v38 }
0x15a4   :  { %2813 = vmatpush3.msra.mxu1 %v1190_v23 }
0x15a5   :  { %2815 = vmatmul.mubr.msk.f32.vlgmr.msra.gmra.mrb[12].mxu1 %vm523_vm2, %v2550_v39 }
0x15b0   :  { %v1195_v43 = vpop.permute.xlu1 %1194 }
0x15e2   :  { %v317_v55 = vpop.xlane.xlu1 %316 }
0x15e3   :  { %v325_v56 = vmul.f32 0.03125, %v317_v55 }
0x15e5   :  { %v333_v57 = vsub.f32 %v271_v46, %v325_v56 }
0x15e7   :  { %v341_v38 = vmul.f32 %v3717_v47, %v333_v57 }
0x15e9   :  { %v349_v54 = vmul.f32 %v341_v38, %v341_v38 }
0x1678   :  { %v1266_v48 = vpop.f32.mrb[12].mxu1 }
0x1679   :  { %v1267_v49 = vadd.f32 %v1266_v48, %v1195_v43  ;;  %v2816_v42 = vpop.f32.mrb[13].mxu1 }
0x167b   :  { %v1270_v58 = vmax.f32 %v1267_v49, 0.0 }
0x167d   :  { %v1271_v59 = vmul.f32 %v3717_v47, %v1270_v58 }
0x167f   :  { %1272 = vadd.xlane.f32.xlu0 %v1271_v59 }
0x1683   :  { %364 = vadd.xlane.f32.xlu0 %v349_v54 }
0x170c   :  { %v1273_v60 = vpop.xlane.xlu0 %1272 }
0x170d   :  { %v1274_v61 = vmul.f32 0.03125, %v1273_v60 }
0x170f   :  { %v1275_v62 = vsub.f32 %v1270_v58, %v1274_v61 }
0x1710   :  { %v365_v63 = vpop.xlane.xlu0 %364 }
0x1711   :  { %v373_v0 = vmul.f32 0.03125, %v365_v63  ;;  %v1276_v1 = vmul.f32 %v3717_v47, %v1275_v62 }
0x1713   :  { %v381_v2 = vadd.f32 1e-05, %v373_v0  ;;  %v1277_v3 = vmul.f32 %v1276_v1, %v1276_v1 }
0x1715   :  { %3188 = vrsqrt.f32 %v381_v2  ;;  %1278 = vadd.xlane.f32.xlu1 %v1277_v3 }
0x171f   :  { %v3189_v6 = vpop.eup %3188 }
0x1720   :  { %v397_v36 = vmul.f32 %v3189_v6, %v279_v4 }
0x1722   :  { %435 = vperm.xlu0 %3157, %v397_v36  }
0x1726   :  { %3160 = vset.pattern.permute.xlu0 %v3284_v22 }
0x1727   :  { %1291 = vperm.xlu0 %3160, %v3498_v25   ;;  %v1303_v25 = vld [vmem:[%s4194_s14] sm:$0xff] }
0x172b   :  { %3161 = vset.pattern.permute.xlu0 %v3273_v5 }
0x172c   :  { %1323 = vperm.xlu0 %3161, %v1305_v15  }
0x1730   :  { %1338 = vperm.xlu0 %3161, %v1308_v20  }
0x1734   :  { %1348 = vperm.xlu0 %3161, %v1310_v16  }
0x17a1   :  { %v436_v17 = vpop.permute.xlu0 %435 }
0x17a2   :  { %v1279_v7 = vpop.xlane.xlu1 %1278  ;;  %v445_v22 = vmul.f32 %v436_v17, %v333_v57 }
0x17a3   :  { %v1280_v8 = vmul.f32 0.03125, %v1279_v7 }
0x17a5   :  { %v1281_v44 = vadd.f32 1e-05, %v1280_v8 }
0x17a6   :  { %v1292_v21 = vpop.permute.xlu0 %1291 }
0x17a7   :  { %3190 = vrsqrt.f32 %v1281_v44 }
0x17ab   :  { %v1324_v35 = vpop.permute.xlu0 %1323 }
0x17af   :  { %v1339_v49 = vpop.permute.xlu0 %1338 }
0x17b1   :  { %v3191_v9 = vpop.eup %3190 }
0x17b2   :  { %v1283_v10 = vmul.f32 %v3191_v9, %v3512_v31  ;;  %v1295_v31 = vld [vmem:[%s4193_s13] sm:$0xff] }
0x17b3   :  { %2833 = vmatprep.mubr.msk.f32.mxu0 %vm134_vm0, %v1295_v31  ;;  %v1349_v2 = vpop.permute.xlu0 %1348 }
0x17b4   :  { %1286 = vperm.xlu1 %3158, %v1283_v10  }
0x17b8   :  { %3159 = vset.pattern.permute.xlu1 %v3273_v5  ;;  %v1306_v5 = vld [vmem:[%s4194_s14 + $0x18] sm:$0xff] }
0x17b9   :  { %483 = vperm.xlu1 %3159, %v287_v11  }
0x17bd   :  { %1313 = vperm.xlu1 %3159, %v1303_v25  }
0x17c1   :  { %1318 = vperm.xlu1 %3159, %v1304_v12  }
0x17c5   :  { %1328 = vperm.xlu1 %3159, %v1306_v5  }
0x17c9   :  { %1333 = vperm.xlu1 %3159, %v1307_v13  }
0x17cd   :  { %1343 = vperm.xlu1 %3159, %v1309_v14  }
0x1833   :  { %v1287_v18 = vpop.permute.xlu1 %1286 }
0x1834   :  { %v1289_v19 = vmul.f32 %v1287_v18, %v1275_v62 }
0x1836   :  { %v1294_v26 = vadd.f32 %v1292_v21, %v1289_v19 }
0x1838   :  { %v484_v24 = vpop.permute.xlu1 %483 }
0x1839   :  { %v493_v27 = vadd.f32 %v484_v24, %v445_v22 }
0x183b   :  { %v3036_v28 = vpack.c.bf16 %v493_v27, %v1294_v26 }
0x183c   :  { %v1314_v45 = vpop.permute.xlu1 %1313 }
0x183d   :  { %3037 = vmatprep.subr.bf16.mxu0 %v3036_v28 }
0x183e   :  { %3039 = vmatpush3.bf16.msra.mxu0 %v3036_v28 }
0x1840   :  { %v1319_v46 = vpop.permute.xlu1 %1318 }
0x1841   :  { %2834 = vmatmul.mubr.msk.f32.vlgmr.msra.gmra.mrb[8].mxu0 %vm134_vm0, %v1296_v29 }
0x1842   :  { %2836 = vmatprep.mubr.msk.f32.mxu0 %vm134_vm0, %v1297_v30 }
0x1844   :  { %v1329_v51 = vpop.permute.xlu1 %1328 }
0x1845   :  { %2837 = vmatmul.mubr.msk.f32.gmra.mrb[10].mxu0 %vm134_vm0, %v1298_v32 }
0x1846   :  { %2839 = vmatprep.mubr.msk.f32.mxu0 %vm134_vm0, %v1299_v33 }
0x1848   :  { %v1334_v58 = vpop.permute.xlu1 %1333 }
0x1849   :  { %2840 = vmatmul.mubr.msk.f32.gmra.mrb[12].mxu0 %vm134_vm0, %v1300_v34 }
0x184a   :  { %2842 = vmatprep.mubr.msk.f32.mxu0 %vm134_vm0, %v1301_v37 }
0x184c   :  { %v1344_v6 = vpop.permute.xlu1 %1343 }
0x184d   :  { %2843 = vmatmul.mubr.msk.f32.gmra.mrb[14].mxu0 %vm134_vm0, %v1302_v41 }
0x1914   :  { %v2835_v50 = vpop.f32.mrb[8].mxu0 }
0x1915   :  { %v1447_v52 = vadd.f32 %v2835_v50, %v1319_v46  ;;  %v1441_v53 = vpop.f32.mrb[9].mxu0 }
0x1916   :  { %v1442_v40 = vadd.f32 %v1441_v53, %v1314_v45 }
0x1917   :  { %v1481_v23 = vmax.f32 %v1447_v52, 0.0 }
0x1918   :  { %v1480_v39 = vmax.f32 %v1442_v40, 0.0  ;;  %v2838_v43 = vpop.f32.mrb[10].mxu0 }
0x1919   :  { %v1457_v55 = vadd.f32 %v2838_v43, %v1329_v51  ;;  %v1451_v56 = vpop.f32.mrb[11].mxu0  ;;  %v1505_v48 = vmul.f32 %v3717_v47, %v1481_v23 }
0x191a   :  { %v1504_v57 = vmul.f32 %v3717_v47, %v1480_v39  ;;  %v1452_v42 = vadd.f32 %v1451_v56, %v1324_v35 }
0x191b   :  { %v1483_v59 = vmax.f32 %v1457_v55, 0.0  ;;  %1514 = vadd.xlane.f32.xlu0 %v1505_v48 }
0x191c   :  { %v1482_v38 = vmax.f32 %v1452_v42, 0.0  ;;  %v2841_v54 = vpop.f32.mrb[12].mxu0  ;;  %1512 = vadd.xlane.f32.xlu1 %v1504_v57 }
0x191d   :  { %v1507_v60 = vmul.f32 %v3717_v47, %v1483_v59  ;;  %v1467_v61 = vadd.f32 %v2841_v54, %v1339_v49  ;;  %v1461_v62 = vpop.f32.mrb[13].mxu0  ;;  %v1499_v54 = vld [vmem:[%s4196_s16 + $0x18] sm:$0xff] }
0x191e   :  { %v1462_v63 = vadd.f32 %v1461_v62, %v1334_v58  ;;  %v1506_v0 = vmul.f32 %v3717_v47, %v1482_v38  ;;  %v1496_v58 = vld [vmem:[%s4196_s16] sm:$0xff]  ;;  %v1705_v62 = vld [vmem:[%s4216_s11 + $0x8] sm:$0xff] }
0x191f   :  { %v1485_v1 = vmax.f32 %v1467_v61, 0.0  ;;  %v1704_v61 = vld [vmem:[%s4216_s11] sm:$0xff] }
0x1920   :  { %v1484_v3 = vmax.f32 %v1462_v63, 0.0  ;;  %v2844_v4 = vpop.f32.mrb[14].mxu0  ;;  %1518 = vadd.xlane.f32.xlu1 %v1507_v60  ;;  %1516 = vadd.xlane.f32.xlu0 %v1506_v0  ;;  %v1501_v60 = vld [vmem:[%s4196_s16 + $0x28] sm:$0xff]  ;;  %v1706_v63 = vld [vmem:[%s4216_s11 + $0x10] sm:$0xff]  ;;  %v3040_v0 = vpack.c.bf16 %v1705_v62, %v1704_v61 }
0x1921   :  { %v1509_v36 = vmul.f32 %v3717_v47, %v1485_v1  ;;  %v1477_v7 = vadd.f32 %v2844_v4, %v1349_v2  ;;  %v1471_v8 = vpop.f32.mrb[15].mxu0  ;;  %v1709_v4 = vld [vmem:[%s4216_s11 + $0x28] sm:$0xff] }
0x1922   :  { %v1472_v44 = vadd.f32 %v1471_v8, %v1344_v6  ;;  %v1508_v9 = vmul.f32 %v3717_v47, %v1484_v3  ;;  %3041 = vmatprep.subr.bf16.mxu1 %v3040_v0 }
0x1923   :  { %v1487_v10 = vmax.f32 %v1477_v7, 0.0  ;;  %3043 = vmatpush3.bf16.msra.mxu1 %v3040_v0  ;;  %v1711_v7 = vld [vmem:[%s4216_s11 + $0x38] sm:$0xff] }
0x1924   :  { %v1486_v11 = vmax.f32 %v1472_v44, 0.0  ;;  %1520 = vadd.xlane.f32.xlu0 %v1508_v9  ;;  %1522 = vadd.xlane.f32.xlu1 %v1509_v36  ;;  %v1710_v36 = vld [vmem:[%s4216_s11 + $0x30] sm:$0xff]  ;;  %v1712_v44 = vld [vmem:[%s4216_s11 + $0x40] sm:$0xff]  ;;  %v1713_v9 = vld [vmem:[%s4216_s11 + $0x48] sm:$0xff] }
0x1925   :  { %v1511_v25 = vmul.f32 %v3717_v47, %v1487_v10  ;;  %v3052_v8 = vpack.c.bf16 %v1711_v7, %v1710_v36  ;;  %v1495_v7 = vld [vmem:[%s4195_s15 + $0x38] sm:$0xff] }
0x1926   :  { %v1510_v12 = vmul.f32 %v3717_v47, %v1486_v11 }
0x1928   :  { %1524 = vadd.xlane.f32.xlu0 %v1510_v12  ;;  %1526 = vadd.xlane.f32.xlu1 %v1511_v25  ;;  %v1715_v25 = vld [vmem:[%s4216_s11 + $0x58] sm:$0xff] }
0x19a8   :  { %v1515_v31 = vpop.xlane.xlu0 %1514 }
0x19a9   :  { %v1529_v5 = vmul.f32 0.03125, %v1515_v31  ;;  %v1513_v13 = vpop.xlane.xlu1 %1512  ;;  %v1716_v31 = vld [vmem:[%s4216_s11 + $0x60] sm:$0xff] }
0x19aa   :  { %v1528_v14 = vmul.f32 0.03125, %v1513_v13 }
0x19ab   :  { %v3805_v15 = vsub.f32 %v1481_v23, %v1529_v5  ;;  %v1717_v5 = vld [vmem:[%s4216_s11 + $0x68] sm:$0xff] }
0x19ac   :  { %v3807_v20 = vsub.f32 %v1480_v39, %v1528_v14  ;;  %v3064_v13 = vpack.c.bf16 %v1717_v5, %v1716_v31  ;;  %v1842_v31 = vld [vmem:[%s4198_s18 + $0x8] sm:$0xff]  ;;  %v1841_v5 = vld [vmem:[%s4198_s18] sm:$0xff] }
0x19ad   :  { %v1519_v16 = vpop.xlane.xlu1 %1518  ;;  %v1517_v17 = vpop.xlane.xlu0 %1516  ;;  %v1545_v18 = vmul.f32 %v3717_v47, %v3805_v15 }
0x19ae   :  { %v1531_v19 = vmul.f32 0.03125, %v1519_v16  ;;  %v1530_v21 = vmul.f32 0.03125, %v1517_v17  ;;  %v1544_v22 = vmul.f32 %v3717_v47, %v3807_v20 }
0x19af   :  { %v1553_v24 = vmul.f32 %v1545_v18, %v1545_v18 }
0x19b0   :  { %v3813_v26 = vsub.f32 %v1483_v59, %v1531_v19  ;;  %v3815_v27 = vsub.f32 %v1482_v38, %v1530_v21  ;;  %v1552_v28 = vmul.f32 %v1544_v22, %v1544_v22  ;;  %v1498_v59 = vld [vmem:[%s4196_s16 + $0x10] sm:$0xff]  ;;  %v1497_v38 = vld [vmem:[%s4196_s16 + $0x8] sm:$0xff] }
0x19b1   :  { %v1523_v29 = vpop.xlane.xlu1 %1522  ;;  %1562 = vadd.xlane.f32.xlu1 %v1553_v24  ;;  %v1521_v30 = vpop.xlane.xlu0 %1520 }
0x19b2   :  { %v1533_v32 = vmul.f32 0.03125, %v1523_v29  ;;  %v1532_v33 = vmul.f32 0.03125, %v1521_v30  ;;  %1560 = vadd.xlane.f32.xlu0 %v1552_v28  ;;  %v1547_v34 = vmul.f32 %v3717_v47, %v3813_v26  ;;  %v1546_v37 = vmul.f32 %v3717_v47, %v3815_v27 }
0x19b4   :  { %v3821_v41 = vsub.f32 %v1485_v1, %v1533_v32  ;;  %v3823_v45 = vsub.f32 %v1484_v3, %v1532_v33  ;;  %v1555_v46 = vmul.f32 %v1547_v34, %v1547_v34  ;;  %v1554_v35 = vmul.f32 %v1546_v37, %v1546_v37  ;;  %v1707_v1 = vld [vmem:[%s4216_s11 + $0x18] sm:$0xff]  ;;  %v1708_v3 = vld [vmem:[%s4216_s11 + $0x20] sm:$0xff] }
0x19b5   :  { %v1527_v50 = vpop.xlane.xlu1 %1526  ;;  %v1525_v51 = vpop.xlane.xlu0 %1524  ;;  %v3044_v2 = vpack.c.bf16 %v1707_v1, %v1706_v63  ;;  %v3048_v6 = vpack.c.bf16 %v1709_v4, %v1708_v3  ;;  %v1493_v1 = vld [vmem:[%s4195_s15 + $0x28] sm:$0xff] }
0x19b6   :  { %v1535_v52 = vmul.f32 0.03125, %v1527_v50  ;;  %v1534_v53 = vmul.f32 0.03125, %v1525_v51  ;;  %1566 = vadd.xlane.f32.xlu1 %v1555_v46  ;;  %1564 = vadd.xlane.f32.xlu0 %v1554_v35  ;;  %v1549_v40 = vmul.f32 %v3717_v47, %v3821_v41  ;;  %v1548_v23 = vmul.f32 %v3717_v47, %v3823_v45 }
0x19b7   :  { %3045 = vmatprep.subr.bf16.mxu1 %v3044_v2 }
0x19b8   :  { %v3829_v39 = vsub.f32 %v1487_v10, %v1535_v52  ;;  %v3831_v43 = vsub.f32 %v1486_v11, %v1534_v53  ;;  %v1557_v55 = vmul.f32 %v1549_v40, %v1549_v40  ;;  %v1556_v56 = vmul.f32 %v1548_v23, %v1548_v23  ;;  %3047 = vmatpush3.bf16.msra.mxu1 %v3044_v2  ;;  %v1714_v11 = vld [vmem:[%s4216_s11 + $0x50] sm:$0xff]  ;;  %v1489_v53 = vld [vmem:[%s4195_s15 + $0x8] sm:$0xff]  ;;  %v1492_v2 = vld [vmem:[%s4195_s15 + $0x20] sm:$0xff] }
0x19b9   :  { %3049 = vmatprep.subr.bf16.mxu1 %v3048_v6  ;;  %v3056_v10 = vpack.c.bf16 %v1713_v9, %v1712_v44  ;;  %v3060_v12 = vpack.c.bf16 %v1715_v25, %v1714_v11  ;;  %v1503_v25 = vld [vmem:[%s4196_s16 + $0x38] sm:$0xff] }
0x19ba   :  { %1570 = vadd.xlane.f32.xlu1 %v1557_v55  ;;  %1568 = vadd.xlane.f32.xlu0 %v1556_v56  ;;  %v1551_v48 = vmul.f32 %v3717_v47, %v3829_v39  ;;  %v1550_v57 = vmul.f32 %v3717_v47, %v3831_v43  ;;  %v1500_v47 = vld [vmem:[%s4196_s16 + $0x20] sm:$0xff] }
0x19bb   :  { %v1488_v55 = vld [vmem:[%s4195_s15] sm:$0xff] }
0x19bc   :  { %v1559_v49 = vmul.f32 %v1551_v48, %v1551_v48  ;;  %v1558_v42 = vmul.f32 %v1550_v57, %v1550_v57  ;;  %3051 = vmatpush3.bf16.msra.mxu1 %v3048_v6 }
0x19bd   :  { %3053 = vmatprep.subr.bf16.mxu1 %v3052_v8 }
0x19be   :  { %1574 = vadd.xlane.f32.xlu1 %v1559_v49  ;;  %1572 = vadd.xlane.f32.xlu0 %v1558_v42 }
0x19c0   :  { %3055 = vmatpush3.bf16.msra.mxu1 %v3052_v8  ;;  %v1494_v8 = vld [vmem:[%s4195_s15 + $0x30] sm:$0xff] }
0x19c1   :  { %3057 = vmatprep.subr.bf16.mxu1 %v3056_v10 }
0x19c4   :  { %3059 = vmatpush3.bf16.msra.mxu1 %v3056_v10 }
0x19c5   :  { %3061 = vmatprep.subr.bf16.mxu1 %v3060_v12 }
0x19c8   :  { %3063 = vmatpush3.bf16.msra.mxu1 %v3060_v12  ;;  %v1502_v12 = vld [vmem:[%s4196_s16 + $0x30] sm:$0xff] }
0x19c9   :  { %3065 = vmatprep.subr.bf16.mxu1 %v3064_v13 }
0x19cc   :  { %3067 = vmatpush3.bf16.msra.mxu1 %v3064_v13  ;;  %v1844_v13 = vld [vmem:[%s4198_s18 + $0x18] sm:$0xff] }
0x19cf   :  { %1658 = vperm.xlu1 %3159, %v1496_v58  }
0x19d3   :  { %1668 = vperm.xlu1 %3159, %v1498_v59   ;;  %v1491_v59 = vld [vmem:[%s4195_s15 + $0x18] sm:$0xff] }
0x19d4   :  { %1663 = vperm.xlu0 %3161, %v1497_v38   ;;  %v1718_v38 = vld [vmem:[%s4216_s11 + $0x70] sm:$0xff] }
0x19d7   :  { %1678 = vperm.xlu1 %3159, %v1500_v47   ;;  %v1719_v47 = vld [vmem:[%s4216_s11 + $0x78] sm:$0xff] }
0x19d8   :  { %1673 = vperm.xlu0 %3161, %v1499_v54   ;;  %v1490_v54 = vld [vmem:[%s4195_s15 + $0x10] sm:$0xff] }
0x19dc   :  { %1683 = vperm.xlu0 %3161, %v1501_v60   ;;  %v3068_v60 = vpack.c.bf16 %v1719_v47, %v1718_v38 }
0x19de   :  { %3069 = vmatprep.subr.bf16.mxu1 %v3068_v60 }
0x19df   :  { %3071 = vmatpush3.bf16.msra.mxu1 %v3068_v60 }
0x1a3e   :  { %v1563_v14 = vpop.xlane.xlu1 %1562 }
0x1a3f   :  { %v1577_v16 = vmul.f32 0.03125, %v1563_v14  ;;  %v1561_v17 = vpop.xlane.xlu0 %1560  ;;  %v1843_v14 = vld [vmem:[%s4198_s18 + $0x10] sm:$0xff] }
0x1a40   :  { %v1576_v18 = vmul.f32 0.03125, %v1561_v17  ;;  %v1845_v17 = vld [vmem:[%s4198_s18 + $0x20] sm:$0xff] }
0x1a41   :  { %v1585_v19 = vadd.f32 1e-05, %v1577_v16  ;;  %v1846_v16 = vld [vmem:[%s4198_s18 + $0x28] sm:$0xff] }
0x1a42   :  { %v1584_v21 = vadd.f32 1e-05, %v1576_v18  ;;  %v1848_v18 = vld [vmem:[%s4198_s18 + $0x38] sm:$0xff] }
0x1a43   :  { %3192 = vrsqrt.f32 %v1585_v19  ;;  %v1567_v22 = vpop.xlane.xlu1 %1566  ;;  %v1565_v24 = vpop.xlane.xlu0 %1564  ;;  %v1847_v19 = vld [vmem:[%s4198_s18 + $0x30] sm:$0xff] }
0x1a44   :  { %3194 = vrsqrt.f32 %v1584_v21  ;;  %v1579_v28 = vmul.f32 0.03125, %v1567_v22  ;;  %v1578_v29 = vmul.f32 0.03125, %v1565_v24  ;;  %v1850_v21 = vld [vmem:[%s4198_s18 + $0x48] sm:$0xff]  ;;  %v1849_v22 = vld [vmem:[%s4198_s18 + $0x40] sm:$0xff]  ;;  %v1852_v24 = vld [vmem:[%s4198_s18 + $0x58] sm:$0xff] }
0x1a46   :  { %v1587_v30 = vadd.f32 1e-05, %v1579_v28  ;;  %v1586_v32 = vadd.f32 1e-05, %v1578_v29  ;;  %v1851_v28 = vld [vmem:[%s4198_s18 + $0x50] sm:$0xff]  ;;  %v1854_v29 = vld [vmem:[%s4198_s18 + $0x68] sm:$0xff] }
0x1a47   :  { %v1571_v33 = vpop.xlane.xlu1 %1570  ;;  %v1569_v34 = vpop.xlane.xlu0 %1568 }
0x1a48   :  { %3196 = vrsqrt.f32 %v1587_v30  ;;  %v1581_v37 = vmul.f32 0.03125, %v1571_v33  ;;  %v1580_v46 = vmul.f32 0.03125, %v1569_v34  ;;  %v1853_v30 = vld [vmem:[%s4198_s18 + $0x60] sm:$0xff]  ;;  %v1855_v33 = vld [vmem:[%s4198_s18 + $0x70] sm:$0xff]  ;;  %v2157_v34 = vld [vmem:[%s4200_s20 + $0x18] sm:$0xff] }
0x1a49   :  { %3198 = vrsqrt.f32 %v1586_v32  ;;  %v1856_v32 = vld [vmem:[%s4198_s18 + $0x78] sm:$0xff] }
0x1a4a   :  { %v1589_v35 = vadd.f32 1e-05, %v1581_v37  ;;  %v1588_v50 = vadd.f32 1e-05, %v1580_v46  ;;  %v2156_v37 = vld [vmem:[%s4200_s20 + $0x10] sm:$0xff]  ;;  %v2159_v46 = vld [vmem:[%s4200_s20 + $0x28] sm:$0xff] }
0x1a4b   :  { %v1575_v51 = vpop.xlane.xlu1 %1574  ;;  %v1573_v52 = vpop.xlane.xlu0 %1572 }
0x1a4c   :  { %3200 = vrsqrt.f32 %v1589_v35  ;;  %v1583_v40 = vmul.f32 0.03125, %v1575_v51  ;;  %v1582_v23 = vmul.f32 0.03125, %v1573_v52  ;;  %v2158_v35 = vld [vmem:[%s4200_s20 + $0x20] sm:$0xff]  ;;  %v2161_v52 = vld [vmem:[%s4200_s20 + $0x38] sm:$0xff] }
0x1a4d   :  { %v3193_v56 = vpop.eup %3192  ;;  %3202 = vrsqrt.f32 %v1588_v50  ;;  %v2160_v50 = vld [vmem:[%s4200_s20 + $0x30] sm:$0xff]  ;;  %v2154_v51 = vld [vmem:[%s4200_s20] sm:$0xff] }
0x1a4e   :  { %v3195_v48 = vpop.eup %3194  ;;  %v1591_v57 = vadd.f32 1e-05, %v1583_v40  ;;  %v1590_v49 = vadd.f32 1e-05, %v1582_v23  ;;  %v1601_v42 = vmul.f32 %v3193_v56, %v1489_v53  ;;  %v2155_v53 = vld [vmem:[%s4200_s20 + $0x8] sm:$0xff] }
0x1a4f   :  { %v1600_v58 = vmul.f32 %v3195_v48, %v1488_v55  ;;  %v1659_v40 = vpop.permute.xlu1 %1658 }
0x1a50   :  { %3204 = vrsqrt.f32 %v1591_v57  ;;  %1615 = vperm.xlu1 %3159, %v1601_v42  }
0x1a51   :  { %3206 = vrsqrt.f32 %v1590_v49  ;;  %1610 = vperm.xlu0 %3161, %v1600_v58  }
0x1a52   :  { %v3197_v61 = vpop.eup %3196 }
0x1a53   :  { %v3199_v62 = vpop.eup %3198  ;;  %v1603_v63 = vmul.f32 %v3197_v61, %v1491_v59  ;;  %v1664_v23 = vpop.permute.xlu0 %1663 }
0x1a54   :  { %v1602_v0 = vmul.f32 %v3199_v62, %v1490_v54  ;;  %v1669_v55 = vpop.permute.xlu1 %1668 }
0x1a55   :  { %1625 = vperm.xlu0 %3161, %v1603_v63  }
0x1a56   :  { %v3201_v3 = vpop.eup %3200  ;;  %1620 = vperm.xlu1 %3159, %v1602_v0  }
0x1a57   :  { %v3203_v4 = vpop.eup %3202  ;;  %v1605_v6 = vmul.f32 %v3201_v3, %v1493_v1  ;;  %v1674_v56 = vpop.permute.xlu0 %1673 }
0x1a58   :  { %v1604_v36 = vmul.f32 %v3203_v4, %v1492_v2  ;;  %v1679_v48 = vpop.permute.xlu1 %1678 }
0x1a59   :  { %1635 = vperm.xlu0 %3161, %v1605_v6  }
0x1a5a   :  { %v3205_v44 = vpop.eup %3204  ;;  %1630 = vperm.xlu1 %3159, %v1604_v36  }
0x1a5b   :  { %v3207_v9 = vpop.eup %3206  ;;  %v1607_v10 = vmul.f32 %v3205_v44, %v1495_v7  ;;  %v1684_v57 = vpop.permute.xlu0 %1683  ;;  %v1825_v44 = vld [vmem:[%s4197_s17] sm:$0xff] }
0x1a5c   :  { %v1606_v11 = vmul.f32 %v3207_v9, %v1494_v8  ;;  %2905 = vmatprep.mubr.msk.f32.mxu0 %vm134_vm0, %v1825_v44 }
0x1a5d   :  { %1645 = vperm.xlu0 %3161, %v1607_v10  }
0x1a5e   :  { %1640 = vperm.xlu1 %3159, %v1606_v11  }
0x1a61   :  { %1693 = vperm.xlu0 %3161, %v1503_v25  }
0x1a62   :  { %1688 = vperm.xlu1 %3159, %v1502_v12  }
0x1a65   :  { %1864 = vperm.xlu0 %3161, %v1842_v31  }
0x1a66   :  { %1859 = vperm.xlu1 %3159, %v1841_v5  }
0x1a69   :  { %1874 = vperm.xlu0 %3161, %v1844_v13  }
0x1a6a   :  { %1869 = vperm.xlu1 %3159, %v1843_v14  }
0x1a6d   :  { %1884 = vperm.xlu0 %3161, %v1846_v16  }
0x1a6e   :  { %1879 = vperm.xlu1 %3159, %v1845_v17   ;;  %v1826_v17 = vld [vmem:[%s4197_s17 + $0x8] sm:$0xff] }
0x1a71   :  { %1894 = vperm.xlu0 %3161, %v1848_v18   ;;  %v1827_v18 = vld [vmem:[%s4197_s17 + $0x10] sm:$0xff] }
0x1a72   :  { %1889 = vperm.xlu1 %3159, %v1847_v19   ;;  %v1828_v19 = vld [vmem:[%s4197_s17 + $0x18] sm:$0xff] }
0x1a75   :  { %1904 = vperm.xlu0 %3161, %v1850_v21   ;;  %v1829_v21 = vld [vmem:[%s4197_s17 + $0x20] sm:$0xff] }
0x1a76   :  { %1899 = vperm.xlu1 %3159, %v1849_v22   ;;  %v1830_v22 = vld [vmem:[%s4197_s17 + $0x28] sm:$0xff] }
0x1a79   :  { %1914 = vperm.xlu0 %3161, %v1852_v24   ;;  %v1831_v24 = vld [vmem:[%s4197_s17 + $0x30] sm:$0xff] }
0x1a7a   :  { %1909 = vperm.xlu1 %3159, %v1851_v28   ;;  %v1832_v28 = vld [vmem:[%s4197_s17 + $0x38] sm:$0xff] }
0x1a7d   :  { %1924 = vperm.xlu0 %3161, %v1854_v29   ;;  %v1833_v29 = vld [vmem:[%s4197_s17 + $0x40] sm:$0xff] }
0x1a7e   :  { %1919 = vperm.xlu1 %3159, %v1853_v30   ;;  %v1834_v30 = vld [vmem:[%s4197_s17 + $0x48] sm:$0xff] }
0x1a81   :  { %1934 = vperm.xlu0 %3161, %v1856_v32   ;;  %v1835_v32 = vld [vmem:[%s4197_s17 + $0x50] sm:$0xff] }
0x1a82   :  { %1929 = vperm.xlu1 %3159, %v1855_v33   ;;  %v1836_v33 = vld [vmem:[%s4197_s17 + $0x58] sm:$0xff] }
0x1a85   :  { %2179 = vperm.xlu0 %3161, %v2157_v34   ;;  %v1837_v34 = vld [vmem:[%s4197_s17 + $0x60] sm:$0xff] }
0x1a86   :  { %2174 = vperm.xlu1 %3159, %v2156_v37   ;;  %v1838_v37 = vld [vmem:[%s4197_s17 + $0x68] sm:$0xff] }
0x1a89   :  { %2189 = vperm.xlu0 %3161, %v2159_v46   ;;  %v1839_v46 = vld [vmem:[%s4197_s17 + $0x70] sm:$0xff] }
0x1a8a   :  { %2184 = vperm.xlu1 %3159, %v2158_v35   ;;  %v1840_v35 = vld [vmem:[%s4197_s17 + $0x78] sm:$0xff]  ;;  %s3285_s17 = smov [#allocation2]  }
0x1a8b   :  { %s2519_s4 = sshll.u32 %s3285_s17, 4  ;;  %s2520_s4 = int_to_ptr.vmem [resolvable:$true] %s2519_s4 }
0x1a8c   :  { %s3249_s16 = scalar_lea.vmem %s2520_s4, 1024  ;;  %p3254_p1 = scmp.lt.s32.totalorder %s2520_s4, %s2520_s4 }
0x1a8d   :  { %2194 = vperm.xlu0 %3161, %v2160_v50   ;;  %v2146_v50 = vld [vmem:[%s4199_s19] sm:$0xff]  ;;  %p3250_p0 = scmp.ne.s32.totalorder %s2520_s4, %s3249_s16  ;;  %p3255_p2 = scmp.lt.s32.totalorder %s3249_s16, %s3249_s16 }
0x1a8e   :  { %2164 = vperm.xlu1 %3159, %v2154_v51  }
0x1a8f   :  { %p3256_p3 = por %p3255_p2, %p3254_p1 }
0x1a91   :  { %2199 = vperm.xlu0 %3161, %v2161_v52   ;;  %p3257_p4 = pnand %p3256_p3, %p3250_p0 }
0x1a92   :  { %2169 = vperm.xlu1 %3159, %v2155_v53  }
0x1acf   :  { %v1616_v49 = vpop.permute.xlu1 %1615 }
0x1ad0   :  { %v1649_v42 = vmul.f32 %v1616_v49, %v3805_v15  ;;  %v1611_v58 = vpop.permute.xlu0 %1610 }
0x1ad1   :  { %v1648_v59 = vmul.f32 %v1611_v58, %v3807_v20 }
0x1ad2   :  { %v4009_v47 = vadd.f32 %v1664_v23, %v1649_v42 }
0x1ad3   :  { %v4007_v38 = vadd.f32 %v1659_v40, %v1648_v59 }
0x1ad4   :  { %v1626_v54 = vpop.permute.xlu0 %1625 }
0x1ad5   :  { %v1621_v60 = vpop.permute.xlu1 %1620  ;;  %v1651_v61 = vmul.f32 %v1626_v54, %v3813_v26  ;;  %2877 = vmatprep.mubr.f32.mxu1 %v4007_v38 }
0x1ad6   :  { %v1650_v62 = vmul.f32 %v1621_v60, %v3815_v27  ;;  %2878 = vmatmul.mubr.f32.vlgmr.msra.gmra.mrb[14].mxu1 %v4009_v47 }
0x1ad7   :  { %v4015_v63 = vadd.f32 %v1674_v56, %v1651_v61 }
0x1ad8   :  { %v4017_v15 = vadd.f32 %v1669_v55, %v1650_v62  ;;  %v1636_v0 = vpop.permute.xlu0 %1635 }
0x1ad9   :  { %v1631_v20 = vpop.permute.xlu1 %1630  ;;  %v1653_v1 = vmul.f32 %v1636_v0, %v3821_v41 }
0x1ada   :  { %v1652_v2 = vmul.f32 %v1631_v20, %v3823_v45  ;;  %2880 = vmatprep.mubr.f32.mxu1 %v4017_v15 }
0x1adb   :  { %v4022_v3 = vadd.f32 %v1684_v57, %v1653_v1  ;;  %2881 = vmatmul.mubr.f32.gmra.mrb[16].mxu1 %v4015_v63 }
0x1adc   :  { %v4025_v26 = vadd.f32 %v1679_v48, %v1652_v2  ;;  %v1646_v27 = vpop.permute.xlu0 %1645 }
0x1add   :  { %v1641_v4 = vpop.permute.xlu1 %1640  ;;  %v1655_v6 = vmul.f32 %v1646_v27, %v3829_v39 }
0x1ade   :  { %2883 = vmatprep.mubr.f32.mxu1 %v4025_v26  ;;  %v1654_v41 = vmul.f32 %v1641_v4, %v3831_v43 }
0x1adf   :  { %2884 = vmatmul.mubr.f32.gmra.mrb[18].mxu1 %v4022_v3 }
0x1ae0   :  { %v1694_v36 = vpop.permute.xlu0 %1693 }
0x1ae1   :  { %v1689_v45 = vpop.permute.xlu1 %1688  ;;  %v4031_v7 = vadd.f32 %v1694_v36, %v1655_v6 }
0x1ae2   :  { %v4033_v8 = vadd.f32 %v1689_v45, %v1654_v41 }
0x1ae4   :  { %2886 = vmatprep.mubr.f32.mxu1 %v4033_v8  ;;  %v1865_v51 = vpop.permute.xlu0 %1864 }
0x1ae5   :  { %2887 = vmatmul.mubr.f32.gmra.mrb[20].mxu1 %v4031_v7  ;;  %v1860_v52 = vpop.permute.xlu1 %1859 }
0x1ae8   :  { %v1875_v53 = vpop.permute.xlu0 %1874 }
0x1ae9   :  { %v1870_v40 = vpop.permute.xlu1 %1869 }
0x1aec   :  { %v1885_v23 = vpop.permute.xlu0 %1884 }
0x1aed   :  { %v1880_v55 = vpop.permute.xlu1 %1879 }
0x1af0   :  { %v1895_v58 = vpop.permute.xlu0 %1894 }
0x1af1   :  { %v1890_v60 = vpop.permute.xlu1 %1889 }
0x1af4   :  { %v1905_v41 = vpop.permute.xlu0 %1904 }
0x1af5   :  { %v1900_v44 = vpop.permute.xlu1 %1899 }
0x1ba9   :  { %v2879_v39 = vpop.f32.mrb[14].mxu1 }
0x1baa   :  { %v1786_v9 = vpop.f32.mrb[15].mxu1 }
0x1bab   :  { %v3072_v10 = vpack.c.bf16 %v2879_v39, %v1786_v9 }
0x1bad   :  { %3073 = vmatprep.subr.bf16.mxu0 %v3072_v10 }
0x1bae   :  { %v2882_v43 = vpop.f32.mrb[16].mxu1  ;;  %3075 = vmatpush3.bf16.msra.mxu0 %v3072_v10 }
0x1baf   :  { %v1796_v11 = vpop.f32.mrb[17].mxu1 }
0x1bb0   :  { %v3076_v25 = vpack.c.bf16 %v2882_v43, %v1796_v11 }
0x1bb2   :  { %v2885_v12 = vpop.f32.mrb[18].mxu1  ;;  %3077 = vmatprep.subr.bf16.mxu0 %v3076_v25 }
0x1bb3   :  { %v1806_v31 = vpop.f32.mrb[19].mxu1  ;;  %3079 = vmatpush3.bf16.msra.mxu0 %v3076_v25 }
0x1bb4   :  { %v3080_v5 = vpack.c.bf16 %v2885_v12, %v1806_v31 }
0x1bb6   :  { %3081 = vmatprep.subr.bf16.mxu0 %v3080_v5 }
0x1bb7   :  { %3083 = vmatpush3.bf16.msra.mxu0 %v3080_v5  ;;  %v1915_v5 = vpop.permute.xlu0 %1914 }
0x1bb8   :  { %v2888_v13 = vpop.f32.mrb[20].mxu1 }
0x1bb9   :  { %v1816_v14 = vpop.f32.mrb[21].mxu1 }
0x1bba   :  { %v3084_v16 = vpack.c.bf16 %v2888_v13, %v1816_v14 }
0x1bbc   :  { %3085 = vmatprep.subr.bf16.mxu0 %v3084_v16 }
0x1bbd   :  { %3087 = vmatpush3.bf16.msra.mxu0 %v3084_v16  ;;  %v1910_v16 = vpop.permute.xlu1 %1909 }
0x1bc0   :  { %2906 = vmatmul.mubr.msk.f32.vlgmr.msra.gmra.mrb[16].mxu0 %vm134_vm0, %v1826_v17 }
0x1bc1   :  { %2908 = vmatprep.mubr.msk.f32.mxu0 %vm134_vm0, %v1827_v18 }
0x1bc4   :  { %2909 = vmatmul.mubr.msk.f32.gmra.mrb[18].mxu0 %vm134_vm0, %v1828_v19 }
0x1bc5   :  { %2911 = vmatprep.mubr.msk.f32.mxu0 %vm134_vm0, %v1829_v21 }
0x1bc8   :  { %2912 = vmatmul.mubr.msk.f32.gmra.mrb[20].mxu0 %vm134_vm0, %v1830_v22 }
0x1bc9   :  { %2914 = vmatprep.mubr.msk.f32.mxu0 %vm134_vm0, %v1831_v24 }
0x1bcc   :  { %2915 = vmatmul.mubr.msk.f32.gmra.mrb[22].mxu0 %vm134_vm0, %v1832_v28 }
0x1bcd   :  { %2917 = vmatprep.mubr.msk.f32.mxu0 %vm134_vm0, %v1833_v29 }
0x1bd0   :  { %2918 = vmatmul.mubr.msk.f32.gmra.mrb[24].mxu0 %vm134_vm0, %v1834_v30 }
0x1bd1   :  { %2920 = vmatprep.mubr.msk.f32.mxu0 %vm134_vm0, %v1835_v32  ;;  %v1925_v32 = vpop.permute.xlu0 %1924 }
0x1bd4   :  { %2921 = vmatmul.mubr.msk.f32.gmra.mrb[26].mxu0 %vm134_vm0, %v1836_v33 }
0x1bd5   :  { %2923 = vmatprep.mubr.msk.f32.mxu0 %vm134_vm0, %v1837_v34 }
0x1bd8   :  { %2924 = vmatmul.mubr.msk.f32.gmra.mrb[28].mxu0 %vm134_vm0, %v1838_v37  ;;  %v1920_v37 = vpop.permute.xlu1 %1919 }
0x1bd9   :  { %2926 = vmatprep.mubr.msk.f32.mxu0 %vm134_vm0, %v1839_v46 }
0x1bdc   :  { %2927 = vmatmul.mubr.msk.f32.gmra.mrb[30].mxu0 %vm134_vm0, %v1840_v35 }
0x1bdd   :  { %2961 = vmatprep.mubr.f32.mxu0 %v2146_v50 }
0x1c93   :  { %v2907_v56 = vpop.f32.mrb[16].mxu0 }
0x1c94   :  { %v2057_v48 = vadd.f32 %v2907_v56, %v1865_v51  ;;  %v2051_v57 = vpop.f32.mrb[17].mxu0 }
0x1c95   :  { %v2052_v49 = vadd.f32 %v2051_v57, %v1860_v52  ;;  %v1930_v57 = vpop.permute.xlu1 %1929 }
0x1c96   :  { %v2131_v42 = vmax.f32 %v2057_v48, 0.0 }
0x1c97   :  { %v2130_v59 = vmax.f32 %v2052_v49, 0.0  ;;  %v2910_v54 = vpop.f32.mrb[18].mxu0 }
0x1c98   :  { %v2067_v61 = vadd.f32 %v2910_v54, %v1875_v53  ;;  %v2061_v62 = vpop.f32.mrb[19].mxu0 }
0x1c99   :  { %v3088_v0 = vpack.c.bf16 %v2131_v42, %v2130_v59  ;;  %v2062_v20 = vadd.f32 %v2061_v62, %v1870_v40  ;;  %v2147_v62 = vld [vmem:[%s4199_s19 + $0x8] sm:$0xff] }
0x1c9a   :  { %v2133_v1 = vmax.f32 %v2067_v61, 0.0 }
0x1c9b   :  { %v2132_v2 = vmax.f32 %v2062_v20, 0.0  ;;  %v2913_v27 = vpop.f32.mrb[20].mxu0  ;;  %3089 = vmatprep.subr.bf16.mxu0 %v3088_v0  ;;  %v2149_v20 = vld [vmem:[%s4199_s19 + $0x18] sm:$0xff] }
0x1c9c   :  { %v2077_v4 = vadd.f32 %v2913_v27, %v1885_v23  ;;  %v2071_v6 = vpop.f32.mrb[21].mxu0  ;;  %3091 = vmatpush3.bf16.msra.mxu0 %v3088_v0  ;;  %v2148_v0 = vld [vmem:[%s4199_s19 + $0x10] sm:$0xff] }
0x1c9d   :  { %v3092_v36 = vpack.c.bf16 %v2133_v1, %v2132_v2  ;;  %v2072_v45 = vadd.f32 %v2071_v6, %v1880_v55  ;;  %v1935_v55 = vpop.permute.xlu0 %1934  ;;  %v2150_v1 = vld [vmem:[%s4199_s19 + $0x20] sm:$0xff]  ;;  %v2151_v2 = vld [vmem:[%s4199_s19 + $0x28] sm:$0xff]  ;;  %v2152_v27 = vld [vmem:[%s4199_s19 + $0x30] sm:$0xff] }
0x1c9e   :  { %v2135_v39 = vmax.f32 %v2077_v4, 0.0  ;;  %v2153_v4 = vld [vmem:[%s4199_s19 + $0x38] sm:$0xff]  ;;  %v2355_v6 = vld [vmem:[%s4217_s24] sm:$0x3] }
0x1c9f   :  { %v2134_v9 = vmax.f32 %v2072_v45, 0.0  ;;  %v2916_v10 = vpop.f32.mrb[22].mxu0  ;;  %3093 = vmatprep.subr.bf16.mxu0 %v3092_v36  ;;  %3120 = vmatprep.subr.msk.mxu1 %vm2381_vm3, %v2355_v6 }
0x1ca0   :  { %v2087_v43 = vadd.f32 %v2916_v10, %v1895_v58  ;;  %v2081_v11 = vpop.f32.mrb[23].mxu0  ;;  %3095 = vmatpush3.bf16.msra.mxu0 %v3092_v36  ;;  %3121 = vmatpush3.msk.msra.mxu1 %vm2381_vm3, %v2355_v6 }
0x1ca1   :  { %v3096_v25 = vpack.c.bf16 %v2135_v39, %v2134_v9  ;;  %v2082_v12 = vadd.f32 %v2081_v11, %v1890_v60  ;;  %v2180_v45 = vpop.permute.xlu0 %2179 }
0x1ca2   :  { %v2137_v31 = vmax.f32 %v2087_v43, 0.0 }
0x1ca3   :  { %v2136_v13 = vmax.f32 %v2082_v12, 0.0  ;;  %v2919_v14 = vpop.f32.mrb[24].mxu0  ;;  %3097 = vmatprep.subr.bf16.mxu0 %v3096_v25 }
0x1ca4   :  { %v2097_v17 = vadd.f32 %v2919_v14, %v1905_v41  ;;  %v2091_v18 = vpop.f32.mrb[25].mxu0  ;;  %3099 = vmatpush3.bf16.msra.mxu0 %v3096_v25  ;;  %v2175_v41 = vpop.permute.xlu1 %2174 }
0x1ca5   :  { %v3100_v19 = vpack.c.bf16 %v2137_v31, %v2136_v13  ;;  %v2092_v21 = vadd.f32 %v2091_v18, %v1900_v44  ;;  %v2190_v39 = vpop.permute.xlu0 %2189 }
0x1ca6   :  { %v2139_v22 = vmax.f32 %v2097_v17, 0.0 }
0x1ca7   :  { %v2138_v24 = vmax.f32 %v2092_v21, 0.0  ;;  %v2922_v28 = vpop.f32.mrb[26].mxu0  ;;  %3101 = vmatprep.subr.bf16.mxu0 %v3100_v19 }
0x1ca8   :  { %v2107_v29 = vadd.f32 %v2922_v28, %v1915_v5  ;;  %v2101_v30 = vpop.f32.mrb[27].mxu0  ;;  %3103 = vmatpush3.bf16.msra.mxu0 %v3100_v19  ;;  %v2185_v36 = vpop.permute.xlu1 %2184 }
0x1ca9   :  { %v3104_v33 = vpack.c.bf16 %v2139_v22, %v2138_v24  ;;  %v2102_v34 = vadd.f32 %v2101_v30, %v1910_v16  ;;  %v2195_v17 = vpop.permute.xlu0 %2194 }
0x1caa   :  { %v2141_v46 = vmax.f32 %v2107_v29, 0.0 }
0x1cab   :  { %v2140_v35 = vmax.f32 %v2102_v34, 0.0  ;;  %v2925_v50 = vpop.f32.mrb[28].mxu0  ;;  %3105 = vmatprep.subr.bf16.mxu0 %v3104_v33 }
0x1cac   :  { %v2117_v51 = vadd.f32 %v2925_v50, %v1925_v32  ;;  %v2111_v52 = vpop.f32.mrb[29].mxu0  ;;  %3107 = vmatpush3.bf16.msra.mxu0 %v3104_v33  ;;  %v2165_v44 = vpop.permute.xlu1 %2164 }
0x1cad   :  { %v3108_v53 = vpack.c.bf16 %v2141_v46, %v2140_v35  ;;  %v2112_v40 = vadd.f32 %v2111_v52, %v1920_v37  ;;  %v2200_v37 = vpop.permute.xlu0 %2199 }
0x1cae   :  { %v2143_v23 = vmax.f32 %v2117_v51, 0.0 }
0x1caf   :  { %v2142_v56 = vmax.f32 %v2112_v40, 0.0  ;;  %v2928_v48 = vpop.f32.mrb[30].mxu0  ;;  %3109 = vmatprep.subr.bf16.mxu0 %v3108_v53 }
0x1cb0   :  { %v2127_v49 = vadd.f32 %v2928_v48, %v1935_v55  ;;  %v2121_v42 = vpop.f32.mrb[31].mxu0  ;;  %3111 = vmatpush3.bf16.msra.mxu0 %v3108_v53  ;;  %v2170_v9 = vpop.permute.xlu1 %2169 }
0x1cb1   :  { %v3112_v58 = vpack.c.bf16 %v2143_v23, %v2142_v56  ;;  %v2122_v59 = vadd.f32 %v2121_v42, %v1930_v57 }
0x1cb2   :  { %v2145_v54 = vmax.f32 %v2127_v49, 0.0 }
0x1cb3   :  { %v2144_v60 = vmax.f32 %v2122_v59, 0.0  ;;  %3113 = vmatprep.subr.bf16.mxu0 %v3112_v58 }
0x1cb4   :  { %3115 = vmatpush3.bf16.msra.mxu0 %v3112_v58 }
0x1cb5   :  { %v3116_v61 = vpack.c.bf16 %v2145_v54, %v2144_v60 }
0x1cb7   :  { %3117 = vmatprep.subr.bf16.mxu0 %v3116_v61 }
0x1cb8   :  { %3119 = vmatpush3.bf16.msra.mxu0 %v3116_v61 }
0x1cb9   :  { %2973 = vmatprep.subr.msk.mxu0 %vm2381_vm3, %v2355_v6 }
0x1cbb   :  { %2962 = vmatmul.mubr.f32.vlgmr.msra.gmra.mrb[32].mxu0 %v2147_v62 }
0x1cbc   :  { %2964 = vmatprep.mubr.f32.mxu0 %v2148_v0  ;;  %2974 = vmatpush3.msk.msra.mxu0 %vm2381_vm3, %v2355_v6 }
0x1cbf   :  { %2965 = vmatmul.mubr.f32.gmra.mrb[34].mxu0 %v2149_v20 }
0x1cc0   :  { %2967 = vmatprep.mubr.f32.mxu0 %v2150_v1 }
0x1cc3   :  { %2968 = vmatmul.mubr.f32.gmra.mrb[36].mxu0 %v2151_v2 }
0x1cc4   :  { %2970 = vmatprep.mubr.f32.mxu0 %v2152_v27 }
0x1cc7   :  { %2971 = vmatmul.mubr.f32.gmra.mrb[38].mxu0 %v2153_v4 }
0x1d8e   :  { %v2963_v10 = vpop.f32.mrb[32].mxu0 }
0x1d8f   :  { %v2274_v43 = vadd.f32 %v2963_v10, %v2170_v9  ;;  %v2268_v11 = vpop.f32.mrb[33].mxu0 }
0x1d90   :  { %v2269_v25 = vadd.f32 %v2268_v11, %v2165_v44 }
0x1d91   :  { %v2308_v12 = vsub.f32 0.0, %v2274_v43 }
0x1d92   :  { %v2307_v31 = vsub.f32 0.0, %v2269_v25  ;;  %v2966_v5 = vpop.f32.mrb[34].mxu0 }
0x1d93   :  { %v2317_v13 = vmul.f32 1.442695, %v2308_v12  ;;  %v2284_v14 = vadd.f32 %v2966_v5, %v2180_v45  ;;  %v2278_v16 = vpop.f32.mrb[35].mxu0  ;;  %v3241_v5 = vld [vmem:[%s4212_s26 + $0x8] sm:$0xff] }
0x1d94   :  { %v2315_v18 = vmul.f32 1.442695, %v2307_v31  ;;  %v2279_v19 = vadd.f32 %v2278_v16, %v2175_v41 }
0x1d95   :  { %3208 = vpow2.f32 %v2317_v13  ;;  %v2310_v21 = vsub.f32 0.0, %v2284_v14  ;;  %v3242_v14 = vld [vmem:[%s4212_s26] sm:$0xff] }
0x1d96   :  { %3210 = vpow2.f32 %v2315_v18  ;;  %v2309_v22 = vsub.f32 0.0, %v2279_v19  ;;  %v2969_v24 = vpop.f32.mrb[36].mxu0 }
0x1d97   :  { %v2321_v28 = vmul.f32 1.442695, %v2310_v21  ;;  %v2294_v29 = vadd.f32 %v2969_v24, %v2190_v39  ;;  %v2288_v30 = vpop.f32.mrb[37].mxu0 }
0x1d98   :  { %v2319_v32 = vmul.f32 1.442695, %v2309_v22  ;;  %v2289_v33 = vadd.f32 %v2288_v30, %v2185_v36  ;;  %v3244_v22 = vld [vmem:[%s4212_s26 + $0x10] sm:$0xff] }
0x1d99   :  { %3212 = vpow2.f32 %v2321_v28  ;;  %v2312_v34 = vsub.f32 0.0, %v2294_v29 }
0x1d9a   :  { %3214 = vpow2.f32 %v2319_v32  ;;  %v2311_v46 = vsub.f32 0.0, %v2289_v33  ;;  %v2972_v35 = vpop.f32.mrb[38].mxu0  ;;  %v3246_v33 = vld [vmem:[%s4212_s26 + $0x20] sm:$0xff] }
0x1d9b   :  { %v2325_v50 = vmul.f32 1.442695, %v2312_v34  ;;  %v2304_v51 = vadd.f32 %v2972_v35, %v2200_v37  ;;  %v2298_v52 = vpop.f32.mrb[39].mxu0  ;;  %v3247_v35 = vld [vmem:[%s4212_s26 + $0x38] sm:$0xff] }
0x1d9c   :  { %v2323_v53 = vmul.f32 1.442695, %v2311_v46  ;;  %v2299_v40 = vadd.f32 %v2298_v52, %v2195_v17 }
0x1d9d   :  { %3216 = vpow2.f32 %v2325_v50  ;;  %v2314_v23 = vsub.f32 0.0, %v2304_v51  ;;  %v3248_v51 = vld [vmem:[%s4212_s26 + $0x30] sm:$0xff] }
0x1d9e   :  { %3218 = vpow2.f32 %v2323_v53  ;;  %v2313_v55 = vsub.f32 0.0, %v2299_v40 }
0x1d9f   :  { %v3209_v56 = vpop.eup %3208  ;;  %v2329_v48 = vmul.f32 1.442695, %v2314_v23 }
0x1da0   :  { %v3211_v57 = vpop.eup %3210  ;;  %v2332_v49 = vadd.f32 1.0, %v3209_v56  ;;  %v2327_v42 = vmul.f32 1.442695, %v2313_v55 }
0x1da1   :  { %v2331_v58 = vadd.f32 1.0, %v3211_v57  ;;  %3220 = vpow2.f32 %v2329_v48 }
0x1da2   :  { %3222 = vrcp.f32 %v2332_v49 }
0x1da3   :  { %v3213_v59 = vpop.eup %3212  ;;  %3224 = vrcp.f32 %v2331_v58 }
0x1da4   :  { %v3215_v54 = vpop.eup %3214  ;;  %v2334_v60 = vadd.f32 1.0, %v3213_v59  ;;  %3226 = vpow2.f32 %v2327_v42 }
0x1da5   :  { %v2333_v61 = vadd.f32 1.0, %v3215_v54 }
0x1da7   :  { %v3217_v62 = vpop.eup %3216  ;;  %3228 = vrcp.f32 %v2333_v61 }
0x1da8   :  { %v3219_v0 = vpop.eup %3218  ;;  %3230 = vrcp.f32 %v2334_v60  ;;  %v2336_v20 = vadd.f32 1.0, %v3217_v62 }
0x1da9   :  { %v2335_v1 = vadd.f32 1.0, %v3219_v0 }
0x1dab   :  { %v3221_v2 = vpop.eup %3220  ;;  %3232 = vrcp.f32 %v2335_v1 }
0x1dac   :  { %v3223_v27 = vpop.eup %3222  ;;  %3234 = vrcp.f32 %v2336_v20  ;;  %v2338_v41 = vadd.f32 1.0, %v3221_v2 }
0x1dad   :  { %v3225_v4 = vpop.eup %3224 }
0x1dae   :  { %v3227_v6 = vpop.eup %3226  ;;  %2975 = vmatprep.mubr.msk.f32.mxu0 %vm2356_vm4, %v3225_v4 }
0x1daf   :  { %v2337_v36 = vadd.f32 1.0, %v3227_v6  ;;  %2976 = vmatmul.mubr.msk.f32.vlgmr.msra.gmra.mrb[40].mxu0 %vm2356_vm4, %v3223_v27 }
0x1db1   :  { %v3229_v45 = vpop.eup %3228  ;;  %3236 = vrcp.f32 %v2337_v36 }
0x1db2   :  { %v3231_v44 = vpop.eup %3230  ;;  %3238 = vrcp.f32 %v2338_v41  ;;  %2978 = vmatprep.mubr.msk.f32.mxu1 %vm2356_vm4, %v3229_v45 }
0x1db3   :  { %2979 = vmatmul.mubr.msk.f32.vlgmr.msra.gmra.mrb[22].mxu1 %vm2356_vm4, %v3231_v44 }
0x1db5   :  { %v3233_v39 = vpop.eup %3232 }
0x1db6   :  { %v3235_v9 = vpop.eup %3234  ;;  %2981 = vmatprep.mubr.msk.f32.mxu1 %vm2356_vm4, %v3233_v39 }
0x1db7   :  { %2982 = vmatmul.mubr.msk.f32.gmra.mrb[24].mxu1 %vm2356_vm4, %v3235_v9 }
0x1dbb   :  { %v3237_v10 = vpop.eup %3236 }
0x1dbc   :  { %v3239_v43 = vpop.eup %3238  ;;  %2984 = vmatprep.mubr.msk.f32.mxu1 %vm2356_vm4, %v3237_v10 }
0x1dbd   :  { %2985 = vmatmul.mubr.msk.f32.gmra.mrb[26].mxu1 %vm2356_vm4, %v3239_v43 }
0x1e82   :  { %v2977_v11 = vpop.f32.mrb[40].mxu0 }
0x1e83   :  { %v2491_v25 = vmul.f32 %v2977_v11, %v4009_v47  ;;  %v2451_v12 = vpop.f32.mrb[41].mxu0 }
0x1e84   :  { %v2490_v31 = vmul.f32 %v2451_v12, %v4007_v38  ;;  %v3243_v38 = vld [vmem:[%s4212_s26 + $0x18] sm:$0xff] }
0x1e85   :  { %v2499_v13 = vadd.f32 %v3241_v5, %v2491_v25 }
0x1e86   :  { %v2498_v16 = vadd.f32 %v3242_v14, %v2490_v31  ;;  %v2980_v17 = vpop.f32.mrb[22].mxu1 }
0x1e87   :  { %2507 = vst [vmem:[#allocation2 + $0x8] sm:$0xff] %v2499_v13  ;;  %v2493_v18 = vmul.f32 %v2980_v17, %v4015_v63  ;;  %v2461_v19 = vpop.f32.mrb[23].mxu1 }
0x1e88   :  { %2506 = vst [vmem:[#allocation2] sm:$0xff] %v2498_v16  ;;  %v2492_v47 = vmul.f32 %v2461_v19, %v4017_v15  ;;  %v3245_v15 = vld [vmem:[%s4212_s26 + $0x28] sm:$0xff] }
0x1e89   :  { %v2501_v21 = vadd.f32 %v3243_v38, %v2493_v18 }
0x1e8a   :  { %v2500_v24 = vadd.f32 %v3244_v22, %v2492_v47  ;;  %v2983_v28 = vpop.f32.mrb[24].mxu1 }
0x1e8b   :  { %2509 = vst [vmem:[#allocation2 + $0x18] sm:$0xff] %v2501_v21  ;;  %v2495_v29 = vmul.f32 %v2983_v28, %v4022_v3  ;;  %v2471_v30 = vpop.f32.mrb[25].mxu1 }
0x1e8c   :  { %2508 = vst [vmem:[#allocation2 + $0x10] sm:$0xff] %v2500_v24  ;;  %v2494_v63 = vmul.f32 %v2471_v30, %v4025_v26 }
0x1e8d   :  { %v2503_v32 = vadd.f32 %v3245_v15, %v2495_v29 }
0x1e8e   :  { %v2502_v34 = vadd.f32 %v3246_v33, %v2494_v63 }
0x1e8f   :  { %2511 = vst [vmem:[#allocation2 + $0x28] sm:$0xff] %v2503_v32 }
0x1e90   :  { %2510 = vst [vmem:[#allocation2 + $0x20] sm:$0xff] %v2502_v34  ;;  %v2986_v37 = vpop.f32.mrb[26].mxu1 }
0x1e91   :  { %v2497_v3 = vmul.f32 %v2986_v37, %v4031_v7  ;;  %v2481_v46 = vpop.f32.mrb[27].mxu1 }
0x1e92   :  { %v2496_v26 = vmul.f32 %v2481_v46, %v4033_v8 }
0x1e93   :  { %v2505_v50 = vadd.f32 %v3247_v35, %v2497_v3 }
0x1e94   :  { %v2504_v52 = vadd.f32 %v3248_v51, %v2496_v26 }
0x1e95   :  { %2513 = vst [vmem:[#allocation2 + $0x38] sm:$0xff] %v2505_v50 }
0x1e96   :  { %2512 = vst [vmem:[#allocation2 + $0x30] sm:$0xff] %v2504_v52 }
0x1e97   :  { %3260 = shalt.err (!%p3257_p4)
}
0x1e98   :  { %s3261_s28 = scalar_lea.hbm %s4201_s21, 1024 }
0x1e99   :  { %p3262_p5 = scmp.ne.s32.totalorder %s4201_s21, %s3261_s28  ;;  %p3265_p6 = scmp.lt.u32.totalorder %s3261_s28, %s4201_s21 }
0x1e9b   :  { %p3267_p7 = pnand %p3265_p6, %p3262_p5 }
0x1e9d   :  { %3270 = shalt.err (!%p3267_p7)
}
0x1e9e   :  { %s3286_s18 = smov 128   ;;  %s3287_s12 = smov 8  }
0x1e9f   :  { %2525 = dma.vmem_to_hbm [thread:$0]  %s2520_s4, 1024, %s4201_s21, [#allocation3], %s3286_s18, %s3286_s18, %s3287_s12  }
0x1ea0   :  { %3271 = dma.done.wait [#allocation3], 1024  }
0x1ea1   :  { %3272 = vsyncadd [#allocation3], 4294966272 }
0x1ea2   :  { %2529 = vsyncpa [#allocation3], 1 }

</bundles_post_ra>
